<compile_context>
chip_gen: v6e
topology: v6e:2x2x1
jax: 0.10.0
libtpu: 0.0.40
codegen_flags: <defaults>
</compile_context>

<pallas_src>
import functools
import math

import jax
import jax.numpy as jnp
from jax import lax
from jax.experimental import pallas as pl
from jax.experimental.pallas import tpu as pltpu


def _round_up(x, m):
    return ((x + m - 1) // m) * m


_VMEM_LIMIT = 64 * 1024 * 1024  # full-K tiles need headroom vs v5e's 16 MiB scoped default


def _pick_m_tile(M, pref=256):
    """Row tile: multiple of 8; full M when small (no padding at all then)."""
    if M <= pref:
        tm = _round_up(M, 8)
        return tm, tm
    return pref, _round_up(M, pref)


def _pick_n_tile(N, pref=512):
    """Column tile: full N when small, else the largest 128-multiple divisor <= pref
    (so the jnp.pad of the weight / bias is elided for BERT-ish dims: 768->384, 3072->512)."""
    if N <= pref:
        return N, N
    tn = pref
    while tn >= 128:
        if N % tn == 0:
            return tn, N
        tn -= 128
    return pref, _round_up(N, pref)


def _gelu_tanh(x):
    # tanh-approx GELU (BERT-style), f32 math (v5e has no bf16 EUP path).
    return 0.5 * x * (1.0 + jnp.tanh(0.7978845608028654 * (x + 0.044715 * x * x * x)))


# ----------------------------------------------------------------------------
# Pallas kernels
# ----------------------------------------------------------------------------

def _linear_kernel(x_ref, w_ref, b_ref, o_ref, *, activation):
    """o = act(x @ w + b); full-K tile, so no cross-step accumulation is needed."""
    acc = jnp.dot(x_ref[...], w_ref[...], preferred_element_type=jnp.float32)
    acc = acc + b_ref[...]
    if activation == "gelu":
        acc = _gelu_tanh(acc)
    elif activation == "tanh":
        acc = jnp.tanh(acc)
    o_ref[...] = acc.astype(o_ref.dtype)


def linear(x, w, b, activation=None, out_dtype=jnp.bfloat16):
    """act(x @ w + b) with bf16 MXU inputs, f32 epilogue, full-K tiles."""
    M, K = x.shape
    N = w.shape[1]
    tm, Mp = _pick_m_tile(M)
    tn, Np = _pick_n_tile(N)

    xp = x.astype(jnp.bfloat16)
    if Mp != M:
        xp = jnp.pad(xp, ((0, Mp - M), (0, 0)))
    wp = w.astype(jnp.bfloat16)
    bp = b.astype(jnp.float32)
    if Np != N:
        wp = jnp.pad(wp, ((0, 0), (0, Np - N)))
        bp = jnp.pad(bp, (0, Np - N))
    bp = bp.reshape(1, Np)

    kernel = functools.partial(_linear_kernel, activation=activation)
    cost = pl.CostEstimate(
        flops=2 * Mp * K * Np,
        transcendentals=Mp * Np if activation in ("gelu", "tanh") else 0,
        bytes_accessed=(Mp * K + K * Np + Mp * Np) * 2 + Np * 4,
    )
    out = pl.pallas_call(
        kernel,
        out_shape=jax.ShapeDtypeStruct((Mp, Np), out_dtype),
        grid=(Mp // tm, Np // tn),
        in_specs=[
            pl.BlockSpec((tm, K), lambda i, j: (i, 0)),
            pl.BlockSpec((K, tn), lambda i, j: (0, j)),
            pl.BlockSpec((1, tn), lambda i, j: (0, j)),
        ],
        out_specs=pl.BlockSpec((tm, tn), lambda i, j: (i, j)),
        compiler_params=pltpu.CompilerParams(
            dimension_semantics=("parallel", "parallel"),
            vmem_limit_bytes=_VMEM_LIMIT),
        cost_estimate=cost,
    )(xp, wp, bp)
    if Mp != M or Np != N:
        out = out[:M, :N]
    return out


def _linear_ln_kernel(x_ref, w_ref, b_ref, r_ref, g_ref, bb_ref, o_ref, *, eps):
    """o = LayerNorm((x @ w + b) + residual); full-row output tile, f32 statistics."""
    acc = jnp.dot(x_ref[...], w_ref[...], preferred_element_type=jnp.float32)
    acc = acc + b_ref[...] + r_ref[...].astype(jnp.float32)
    mean = jnp.mean(acc, axis=-1, keepdims=True)
    var = jnp.mean((acc - mean) ** 2, axis=-1, keepdims=True)
    y = (acc - mean) * lax.rsqrt(var + eps)
    o_ref[...] = (y * g_ref[...] + bb_ref[...]).astype(o_ref.dtype)


def linear_residual_layernorm(x, w, b, residual, gamma, beta, eps=1e-12,
                              out_dtype=jnp.bfloat16):
    """Fused projection + bias + residual add + LayerNorm (tn = full output row = D)."""
    M, K = x.shape
    N = w.shape[1]
    tm, Mp = _pick_m_tile(M)

    xp = x.astype(jnp.bfloat16)
    rp = residual.astype(jnp.bfloat16)
    if Mp != M:
        xp = jnp.pad(xp, ((0, Mp - M), (0, 0)))
        rp = jnp.pad(rp, ((0, Mp - M), (0, 0)))
    wp = w.astype(jnp.bfloat16)
    bp = b.astype(jnp.float32).reshape(1, N)
    gp = gamma.astype(jnp.float32).reshape(1, N)
    betap = beta.astype(jnp.float32).reshape(1, N)

    kernel = functools.partial(_linear_ln_kernel, eps=eps)
    cost = pl.CostEstimate(
        flops=2 * Mp * K * N + 8 * Mp * N,
        transcendentals=Mp,
        bytes_accessed=(Mp * K + K * N + 2 * Mp * N) * 2 + 3 * N * 4,
    )
    out = pl.pallas_call(
        kernel,
        out_shape=jax.ShapeDtypeStruct((Mp, N), out_dtype),
        grid=(Mp // tm,),
        in_specs=[
            pl.BlockSpec((tm, K), lambda i: (i, 0)),
            pl.BlockSpec((K, N), lambda i: (0, 0)),
            pl.BlockSpec((1, N), lambda i: (0, 0)),
            pl.BlockSpec((tm, N), lambda i: (i, 0)),
            pl.BlockSpec((1, N), lambda i: (0, 0)),
            pl.BlockSpec((1, N), lambda i: (0, 0)),
        ],
        out_specs=pl.BlockSpec((tm, N), lambda i: (i, 0)),
        compiler_params=pltpu.CompilerParams(
            dimension_semantics=("parallel",),
            vmem_limit_bytes=_VMEM_LIMIT),
        cost_estimate=cost,
    )(xp, wp, bp, rp, gp, betap)
    if Mp != M:
        out = out[:M]
    return out


def _layernorm_kernel(x_ref, g_ref, b_ref, o_ref, *, eps):
    x = x_ref[...].astype(jnp.float32)
    mean = jnp.mean(x, axis=-1, keepdims=True)
    var = jnp.mean((x - mean) ** 2, axis=-1, keepdims=True)
    y = (x - mean) * lax.rsqrt(var + eps)
    o_ref[...] = (y * g_ref[...] + b_ref[...]).astype(o_ref.dtype)


def layernorm(x, gamma, beta, eps=1e-12, out_dtype=jnp.bfloat16):
    """Standalone row-tiled LayerNorm (only used for the embedding LN)."""
    M, D = x.shape
    tm, Mp = _pick_m_tile(M, pref=512)   # HBM-bound: big row tiles
    xp = x if Mp == M else jnp.pad(x, ((0, Mp - M), (0, 0)))
    out = pl.pallas_call(
        functools.partial(_layernorm_kernel, eps=eps),
        out_shape=jax.ShapeDtypeStruct((Mp, D), out_dtype),
        grid=(Mp // tm,),
        in_specs=[
            pl.BlockSpec((tm, D), lambda i: (i, 0)),
            pl.BlockSpec((1, D), lambda i: (0, 0)),
            pl.BlockSpec((1, D), lambda i: (0, 0)),
        ],
        out_specs=pl.BlockSpec((tm, D), lambda i: (i, 0)),
        compiler_params=pltpu.CompilerParams(dimension_semantics=("parallel",)),
    )(xp, gamma.astype(jnp.float32).reshape(1, D), beta.astype(jnp.float32).reshape(1, D))
    return out[:M] if Mp != M else out


def _attention_kernel(qkv_ref, bias_ref, o_ref, *, scale):
    """One batch element, all heads: softmax(q k^T * scale + mask) v, deferred normalization.

    Input block: (1, S, 3, H, Dh) straight from the fused QKV matmul output (no HBM relayout).
    Output block: (1, S, H, Dh) so the merge back to (B*S, D) is a free reshape.
    """
    qkv = qkv_ref[...]                             # (1, S, 3, H, Dh) bf16
    q = qkv[0, :, 0]                               # (S, H, Dh)
    k = qkv[0, :, 1]
    v = qkv[0, :, 2]
    # Contract over Dh (no explicit k transpose in HBM); f32 scores.
    s = jnp.einsum("qhd,khd->hqk", q, k, preferred_element_type=jnp.float32) * scale
    s = s + bias_ref[0]                            # (1, S) key-mask bias broadcast
    m = jnp.max(s, axis=-1, keepdims=True)
    p = jnp.exp(s - m)                             # unnormalized probabilities
    denom = jnp.sum(p, axis=-1, keepdims=True)     # (H, S, 1)
    ctx = jnp.einsum("hqk,khd->hqd", p.astype(v.dtype), v,
                     preferred_element_type=jnp.float32)
    # Deferred softmax normalization on the (H, S, Dh) context (EUP reciprocal).
    ctx = ctx * pl.reciprocal(denom, approx=True)
    # In-VMEM head reorder (XLU) so the HBM store is already in (S, H, Dh) order.
    o_ref[0] = jnp.transpose(ctx, (1, 0, 2)).astype(o_ref.dtype)


def attention(qkv, bias, scale):
    # qkv: (B, S, 3, H, Dh) bf16 (free reshape of the (B*S, 3D) matmul output)
    # bias: (B, 1, S) f32 key-mask bias shared across heads and query positions.
    B, S, _, H, Dh = qkv.shape
    kernel = functools.partial(_attention_kernel, scale=scale)
    cost = pl.CostEstimate(
        flops=4 * B * H * S * S * Dh,
        transcendentals=B * H * S * S,
        bytes_accessed=4 * B * S * H * Dh * 2 + B * S * 4,
    )
    return pl.pallas_call(
        kernel,
        out_shape=jax.ShapeDtypeStruct((B, S, H, Dh), jnp.bfloat16),
        grid=(B,),
        in_specs=[
            pl.BlockSpec((1, S, 3, H, Dh), lambda b: (b, 0, 0, 0, 0)),
            pl.BlockSpec((1, 1, S), lambda b: (b, 0, 0)),
        ],
        out_specs=pl.BlockSpec((1, S, H, Dh), lambda b: (b, 0, 0, 0)),
        compiler_params=pltpu.CompilerParams(dimension_semantics=("parallel",)),
        cost_estimate=cost,
    )(qkv, bias)


def _pooler_classifier_kernel(x_ref, pw_ref, pb_ref, cw_ref, cb_ref, o_ref):
    """logits = tanh(cls @ pool_w + pool_b) @ cls_w + cls_b, fully VMEM-resident."""
    pooled = jnp.dot(x_ref[...], pw_ref[...], preferred_element_type=jnp.float32)
    pooled = jnp.tanh(pooled + pb_ref[...])
    logits = jnp.dot(pooled.astype(cw_ref.dtype), cw_ref[...],
                     preferred_element_type=jnp.float32) + cb_ref[...]
    o_ref[...] = logits


def pooler_classifier(cls_tok, pool_w, pool_b, cls_w, cls_b):
    B, D = cls_tok.shape
    C = cls_w.shape[1]
    # Single launch, whole arrays as blocks (no grid, no padding, no slice-back).
    return pl.pallas_call(
        _pooler_classifier_kernel,
        out_shape=jax.ShapeDtypeStruct((B, C), jnp.float32),
    )(cls_tok.astype(jnp.bfloat16),
      pool_w.astype(jnp.bfloat16), pool_b.astype(jnp.float32).reshape(1, D),
      cls_w.astype(jnp.bfloat16), cls_b.astype(jnp.float32).reshape(1, C))


# ----------------------------------------------------------------------------
# Model glue (embeddings, mask, parameter setup) in plain JAX
# ----------------------------------------------------------------------------

def gen_attention_mask(token_ids, valid_length):
    # attention_mask[i][:valid_length[i]] = 1
    S = token_ids.shape[1]
    idx = jnp.arange(S, dtype=jnp.int32)[None, :]
    return (idx < valid_length[:, None].astype(jnp.int32)).astype(jnp.float32)


def init_params(key, vocab_size, type_vocab_size, max_pos, hidden, num_heads,
                intermediate, num_layers, num_classes):
    def nrm(k, shape, scale=0.02):
        return scale * jax.random.normal(k, shape, dtype=jnp.float32)

    keys = jax.random.split(key, 8 + num_layers)
    params = {
        "word_emb": nrm(keys[0], (vocab_size, hidden)),
        "pos_emb": nrm(keys[1], (max_pos, hidden)),
        "type_emb": nrm(keys[2], (type_vocab_size, hidden)),
        "emb_ln_g": jnp.ones((hidden,), jnp.float32),
        "emb_ln_b": jnp.zeros((hidden,), jnp.float32),
        "pool_w": nrm(keys[3], (hidden, hidden)),
        "pool_b": jnp.zeros((hidden,), jnp.float32),
        "cls_w": nrm(keys[4], (hidden, num_classes)),
        "cls_b": jnp.zeros((num_classes,), jnp.float32),
        "layers": [],
    }
    for li in range(num_layers):
        lk = jax.random.split(keys[8 + li], 4)
        params["layers"].append({
            # Fused QKV projection weight, columns ordered (3, H, Dh)-major.
            # NOTE: porting pretrained [Wq|Wk|Wv] weights requires the same ordering.
            "w_qkv": nrm(lk[0], (hidden, 3 * hidden)),
            "b_qkv": jnp.zeros((3 * hidden,), jnp.float32),
            "wo": nrm(lk[1], (hidden, hidden)), "bo": jnp.zeros((hidden,), jnp.float32),
            "ln1_g": jnp.ones((hidden,), jnp.float32), "ln1_b": jnp.zeros((hidden,), jnp.float32),
            "w1": nrm(lk[2], (hidden, intermediate)), "b1": jnp.zeros((intermediate,), jnp.float32),
            "w2": nrm(lk[3], (intermediate, hidden)), "b2": jnp.zeros((hidden,), jnp.float32),
            "ln2_g": jnp.ones((hidden,), jnp.float32), "ln2_b": jnp.zeros((hidden,), jnp.float32),
        })
    return params


@functools.partial(jax.jit, static_argnames=("num_heads",))
def bert_classifier_forward(params, token_ids, valid_length, segment_ids, *, num_heads):
    B, S = token_ids.shape
    D = params["word_emb"].shape[1]
    H = num_heads
    Dh = D // H

    # BERTClassifier.gen_attention_mask
    attention_mask = gen_attention_mask(token_ids, valid_length)            # (B, S) float 0/1

    # --- synthetic BERT encoder ---
    # TODO(synk): embedding gathers stay in plain JAX (no clean Pallas win at these shapes).
    emb = (params["word_emb"][token_ids]
           + params["pos_emb"][jnp.arange(S)][None, :, :]
           + params["type_emb"][segment_ids.astype(jnp.int32)])             # (B, S, D) f32
    x = layernorm(emb.reshape(B * S, D), params["emb_ln_g"], params["emb_ln_b"])

    # Shared per-key mask bias, one row per batch element (no H x S broadcast in HBM).
    bias = ((1.0 - attention_mask) * -1e9)[:, None, :].astype(jnp.float32)  # (B, 1, S)

    scale = 1.0 / math.sqrt(Dh)
    for layer in params["layers"]:
        # Fused QKV projection: one pallas_call producing (B*S, 3D); the head split below is
        # a FREE contiguous reshape (consumed directly by the attention kernel's BlockSpec).
        qkv = linear(x, layer["w_qkv"], layer["b_qkv"])                     # (B*S, 3D) bf16
        qkv = qkv.reshape(B, S, 3, H, Dh)

        ctx = attention(qkv, bias, scale)                                   # (B, S, H, Dh)
        ctx = ctx.reshape(B * S, D)                                         # free reshape

        # wo projection + bias + residual + LayerNorm fused into one kernel.
        x = linear_residual_layernorm(ctx, layer["wo"], layer["bo"],
                                      residual=x,
                                      gamma=layer["ln1_g"], beta=layer["ln1_b"])
        ffn = linear(x, layer["w1"], layer["b1"], activation="gelu")
        # w2 projection + bias + residual + LayerNorm fused into one kernel.
        x = linear_residual_layernorm(ffn, layer["w2"], layer["b2"],
                                      residual=x,
                                      gamma=layer["ln2_g"], beta=layer["ln2_b"])

    seq_out = x.reshape(B, S, D)
    cls_tok = seq_out[:, 0, :]                                              # (B, D)

    # dr_rate=None in this build -> dropout skipped (identity at inference anyway).
    # TODO(synk): training-mode dropout (pltpu.prng_*) not implemented (module default dr_rate=None).
    logits = pooler_classifier(cls_tok, params["pool_w"], params["pool_b"],
                               params["cls_w"], params["cls_b"])            # (B, num_classes)
    return logits


# ----------------------------------------------------------------------------
# Main
# ----------------------------------------------------------------------------

if __name__ == "__main__":
    key = jax.random.PRNGKey(0)
    B, S = 2, 8
    hidden, num_heads, intermediate, num_layers = 32, 2, 64, 2
    vocab_size, type_vocab_size, max_pos, num_classes = 50, 2, 64, 2

    k_param, k_tok, k_seg = jax.random.split(key, 3)
    params = init_params(k_param, vocab_size, type_vocab_size, max_pos, hidden,
                         num_heads, intermediate, num_layers, num_classes)

    token_ids = jax.random.randint(k_tok, (B, S), 0, vocab_size, dtype=jnp.int32)
    valid_length = jnp.array([5, 8], dtype=jnp.int32)
    segment_ids = jax.random.randint(k_seg, (B, S), 0, type_vocab_size, dtype=jnp.int32)

    logits = bert_classifier_forward(params, token_ids, valid_length, segment_ids,
                                     num_heads=num_heads)
    logits = jax.block_until_ready(logits)
    assert logits.shape == (B, num_classes)
    assert bool(jnp.all(jnp.isfinite(logits)))
    print("KERNEL_OK")
</pallas_src>

<mosaic_0001>
module attributes {stable_mosaic.version = 11 : i64} {
  func.func @_layernorm_kernel(%arg0: i32, %arg1: memref<16x32xf32, #tpu.memory_space<vmem>>, %arg2: memref<1x32xf32, #tpu.memory_space<vmem>>, %arg3: memref<1x32xf32, #tpu.memory_space<vmem>>, %arg4: memref<16x32xbf16, #tpu.memory_space<vmem>>) attributes {dimension_semantics = [#tpu.dimension_semantics<parallel>], iteration_bounds = array<i64: 1>, scalar_prefetch = 0 : i64, scratch_operands = 0 : i64, tpu.core_type = #tpu.core_type<tc>, window_params = [{transform_indices = @transform_0, window_bounds = array<i64: 16, 32>}, {pipeline_mode = #tpu.pipeline_mode<synchronous>, transform_indices = @transform_1, window_bounds = array<i64: 1, 32>}, {pipeline_mode = #tpu.pipeline_mode<synchronous>, transform_indices = @transform_2, window_bounds = array<i64: 1, 32>}, {transform_indices = @transform_3, window_bounds = array<i64: 16, 32>}]} {
    %c0 = arith.constant 0 : index
    %c0_0 = arith.constant 0 : index
    %0 = vector.load %arg1[%c0, %c0_0] : memref<16x32xf32, #tpu.memory_space<vmem>>, vector<16x32xf32>
    %cst = arith.constant dense<0.000000e+00> : vector<16xf32>
    %1 = vector.multi_reduction <add>, %0, %cst [1] : vector<16x32xf32> to vector<16xf32>
    %2 = vector.shape_cast %1 : vector<16xf32> to vector<16x1xf32>
    %cst_1 = arith.constant 3.200000e+01 : f32
    %3 = vector.broadcast %cst_1 : f32 to vector<16x1xf32>
    %4 = arith.divf %2, %3 : vector<16x1xf32>
    %5 = vector.broadcast %4 : vector<16x1xf32> to vector<16x32xf32>
    %6 = arith.subf %0, %5 : vector<16x32xf32>
    %7 = arith.mulf %6, %6 : vector<16x32xf32>
    %cst_2 = arith.constant dense<0.000000e+00> : vector<16xf32>
    %8 = vector.multi_reduction <add>, %7, %cst_2 [1] : vector<16x32xf32> to vector<16xf32>
    %9 = vector.shape_cast %8 : vector<16xf32> to vector<16x1xf32>
    %cst_3 = arith.constant 3.200000e+01 : f32
    %10 = vector.broadcast %cst_3 : f32 to vector<16x1xf32>
    %11 = arith.divf %9, %10 : vector<16x1xf32>
    %12 = vector.broadcast %4 : vector<16x1xf32> to vector<16x32xf32>
    %13 = arith.subf %0, %12 : vector<16x32xf32>
    %cst_4 = arith.constant 9.99999996E-13 : f32
    %14 = vector.broadcast %cst_4 : f32 to vector<16x1xf32>
    %15 = arith.addf %11, %14 : vector<16x1xf32>
    %16 = math.rsqrt %15 : vector<16x1xf32>
    %17 = vector.broadcast %16 : vector<16x1xf32> to vector<16x32xf32>
    %18 = arith.mulf %13, %17 : vector<16x32xf32>
    %c0_5 = arith.constant 0 : index
    %c0_6 = arith.constant 0 : index
    %19 = vector.load %arg2[%c0_5, %c0_6] : memref<1x32xf32, #tpu.memory_space<vmem>>, vector<1x32xf32>
    %20 = vector.broadcast %19 : vector<1x32xf32> to vector<16x32xf32>
    %21 = arith.mulf %18, %20 : vector<16x32xf32>
    %c0_7 = arith.constant 0 : index
    %c0_8 = arith.constant 0 : index
    %22 = vector.load %arg3[%c0_7, %c0_8] : memref<1x32xf32, #tpu.memory_space<vmem>>, vector<1x32xf32>
    %23 = vector.broadcast %22 : vector<1x32xf32> to vector<16x32xf32>
    %24 = arith.addf %21, %23 : vector<16x32xf32>
    %25 = arith.truncf %24 : vector<16x32xf32> to vector<16x32xbf16>
    %c0_9 = arith.constant 0 : index
    %c0_10 = arith.constant 0 : index
    %26 = vector.load %arg4[%c0_9, %c0_10] : memref<16x32xbf16, #tpu.memory_space<vmem>>, vector<16x32xbf16>
    tpu.vector_store %arg4[%c0_9, %c0_10], %25 {strides = array<i32>} : memref<16x32xbf16, #tpu.memory_space<vmem>>, vector<16x32xbf16>,
    return
  }
  func.func @transform_0(%arg0: i32) -> (i32, i32) {
    %c0_i32 = arith.constant 0 : i32
    %c0_i32_0 = arith.constant 0 : i32
    return %arg0, %c0_i32 : i32, i32
  }
  func.func @transform_1(%arg0: i32) -> (i32, i32) {
    %c0_i32 = arith.constant 0 : i32
    %c0_i32_0 = arith.constant 0 : i32
    %c0_i32_1 = arith.constant 0 : i32
    return %c0_i32, %c0_i32_0 : i32, i32
  }
  func.func @transform_2(%arg0: i32) -> (i32, i32) {
    %c0_i32 = arith.constant 0 : i32
    %c0_i32_0 = arith.constant 0 : i32
    %c0_i32_1 = arith.constant 0 : i32
    return %c0_i32, %c0_i32_0 : i32, i32
  }
  func.func @transform_3(%arg0: i32) -> (i32, i32) {
    %c0_i32 = arith.constant 0 : i32
    %c0_i32_0 = arith.constant 0 : i32
    return %arg0, %c0_i32 : i32, i32
  }
}

module attributes {stable_mosaic.version = 11 : i64} {
  func.func @_linear_kernel(%arg0: i32, %arg1: i32, %arg2: memref<16x32xbf16, #tpu.memory_space<vmem>>, %arg3: memref<32x96xbf16, #tpu.memory_space<vmem>>, %arg4: memref<1x96xf32, #tpu.memory_space<vmem>>, %arg5: memref<16x96xbf16, #tpu.memory_space<vmem>>) attributes {dimension_semantics = [#tpu.dimension_semantics<parallel>, #tpu.dimension_semantics<parallel>], iteration_bounds = array<i64: 1, 1>, scalar_prefetch = 0 : i64, scratch_operands = 0 : i64, tpu.core_type = #tpu.core_type<tc>, window_params = [{transform_indices = @transform_0, window_bounds = array<i64: 16, 32>}, {transform_indices = @transform_1, window_bounds = array<i64: 32, 96>}, {transform_indices = @transform_2, window_bounds = array<i64: 1, 96>}, {transform_indices = @transform_3, window_bounds = array<i64: 16, 96>}]} {
    %c0 = arith.constant 0 : index
    %c0_0 = arith.constant 0 : index
    %0 = vector.load %arg2[%c0, %c0_0] : memref<16x32xbf16, #tpu.memory_space<vmem>>, vector<16x32xbf16>
    %c0_1 = arith.constant 0 : index
    %c0_2 = arith.constant 0 : index
    %1 = vector.load %arg3[%c0_1, %c0_2] : memref<32x96xbf16, #tpu.memory_space<vmem>>, vector<32x96xbf16>
    %cst = arith.constant dense<0.000000e+00> : vector<16x96xf32>
    %2 = tpu.matmul %0, %1, %cst {dimension_numbers = #tpu.dot_dimension_numbers<[1], [0], [0], [1], [0, 0, 1, 1], [], []>} : vector<16x32xbf16>, vector<32x96xbf16>, vector<16x96xf32> -> vector<16x96xf32>
    %c0_3 = arith.constant 0 : index
    %c0_4 = arith.constant 0 : index
    %3 = vector.load %arg4[%c0_3, %c0_4] : memref<1x96xf32, #tpu.memory_space<vmem>>, vector<1x96xf32>
    %4 = vector.broadcast %3 : vector<1x96xf32> to vector<16x96xf32>
    %5 = arith.addf %2, %4 : vector<16x96xf32>
    %6 = arith.truncf %5 : vector<16x96xf32> to vector<16x96xbf16>
    %c0_5 = arith.constant 0 : index
    %c0_6 = arith.constant 0 : index
    %7 = vector.load %arg5[%c0_5, %c0_6] : memref<16x96xbf16, #tpu.memory_space<vmem>>, vector<16x96xbf16>
    tpu.vector_store %arg5[%c0_5, %c0_6], %6 {strides = array<i32>} : memref<16x96xbf16, #tpu.memory_space<vmem>>, vector<16x96xbf16>,
    return
  }
  func.func @transform_0(%arg0: i32, %arg1: i32) -> (i32, i32) {
    %c0_i32 = arith.constant 0 : i32
    %c0_i32_0 = arith.constant 0 : i32
    return %arg0, %c0_i32 : i32, i32
  }
  func.func @transform_1(%arg0: i32, %arg1: i32) -> (i32, i32) {
    %c0_i32 = arith.constant 0 : i32
    %c0_i32_0 = arith.constant 0 : i32
    return %c0_i32, %arg1 : i32, i32
  }
  func.func @transform_2(%arg0: i32, %arg1: i32) -> (i32, i32) {
    %c0_i32 = arith.constant 0 : i32
    %c0_i32_0 = arith.constant 0 : i32
    return %c0_i32, %arg1 : i32, i32
  }
  func.func @transform_3(%arg0: i32, %arg1: i32) -> (i32, i32) {
    %c0_i32 = arith.constant 0 : i32
    return %arg0, %arg1 : i32, i32
  }
}

module attributes {stable_mosaic.version = 11 : i64} {
  func.func @_attention_kernel(%arg0: i32, %arg1: memref<1x8x3x2x16xbf16, #tpu.memory_space<vmem>>, %arg2: memref<1x1x8xf32, #tpu.memory_space<vmem>>, %arg3: memref<1x8x2x16xbf16, #tpu.memory_space<vmem>>) attributes {dimension_semantics = [#tpu.dimension_semantics<parallel>], iteration_bounds = array<i64: 2>, scalar_prefetch = 0 : i64, scratch_operands = 0 : i64, tpu.core_type = #tpu.core_type<tc>, window_params = [{transform_indices = @transform_0, window_bounds = array<i64: 1, 8, 3, 2, 16>}, {transform_indices = @transform_1, window_bounds = array<i64: 1, 1, 8>}, {transform_indices = @transform_2, window_bounds = array<i64: 1, 8, 2, 16>}]} {
    %c0 = arith.constant 0 : index
    %c0_0 = arith.constant 0 : index
    %c0_1 = arith.constant 0 : index
    %c0_2 = arith.constant 0 : index
    %c0_3 = arith.constant 0 : index
    %0 = vector.load %arg1[%c0, %c0_0, %c0_1, %c0_2, %c0_3] : memref<1x8x3x2x16xbf16, #tpu.memory_space<vmem>>, vector<1x8x3x2x16xbf16>
    %1 = vector.extract_strided_slice %0 {offsets = [0, 0, 0, 0, 0], sizes = [1, 8, 1, 2, 16], strides = [1, 1, 1, 1, 1]} : vector<1x8x3x2x16xbf16> to vector<1x8x1x2x16xbf16>
    %2 = vector.shape_cast %1 : vector<1x8x1x2x16xbf16> to vector<8x2x16xbf16>
    %3 = vector.extract_strided_slice %0 {offsets = [0, 0, 1, 0, 0], sizes = [1, 8, 1, 2, 16], strides = [1, 1, 1, 1, 1]} : vector<1x8x3x2x16xbf16> to vector<1x8x1x2x16xbf16>
    %4 = vector.shape_cast %3 : vector<1x8x1x2x16xbf16> to vector<8x2x16xbf16>
    %5 = vector.extract_strided_slice %0 {offsets = [0, 0, 2, 0, 0], sizes = [1, 8, 1, 2, 16], strides = [1, 1, 1, 1, 1]} : vector<1x8x3x2x16xbf16> to vector<1x8x1x2x16xbf16>
    %6 = vector.shape_cast %5 : vector<1x8x1x2x16xbf16> to vector<8x2x16xbf16>
    "tpu.trace_start"() <{level = 10 : i32, message = "qhd,khd->hqk"}> : () -> ()
    %cst = arith.constant dense<0.000000e+00> : vector<2x8x8xf32>
    %7 = tpu.matmul %2, %4, %cst {dimension_numbers = #tpu.dot_dimension_numbers<[2], [2], [0], [0], [0, 1, 0, 0, 1, 0], [1], [1]>} : vector<8x2x16xbf16>, vector<8x2x16xbf16>, vector<2x8x8xf32> -> vector<2x8x8xf32>
    "tpu.trace_stop"() : () -> ()
    %cst_4 = arith.constant 2.500000e-01 : f32
    %8 = vector.broadcast %cst_4 : f32 to vector<2x8x8xf32>
    %9 = arith.mulf %7, %8 : vector<2x8x8xf32>
    %c0_5 = arith.constant 0 : index
    %c0_6 = arith.constant 0 : index
    %c0_7 = arith.constant 0 : index
    %10 = vector.load %arg2[%c0_5, %c0_6, %c0_7] : memref<1x1x8xf32, #tpu.memory_space<vmem>>, vector<1x1x8xf32>
    %11 = vector.shape_cast %10 : vector<1x1x8xf32> to vector<1x8xf32>
    %12 = vector.shape_cast %11 : vector<1x8xf32> to vector<1x1x8xf32>
    %13 = vector.broadcast %12 : vector<1x1x8xf32> to vector<2x8x8xf32>
    %14 = arith.addf %9, %13 : vector<2x8x8xf32>
    %cst_8 = arith.constant dense<0xFF800000> : vector<2x8xf32>
    %15 = vector.multi_reduction <maximumf>, %14, %cst_8 [2] : vector<2x8x8xf32> to vector<2x8xf32>
    %16 = vector.shape_cast %15 : vector<2x8xf32> to vector<2x8x1xf32>
    %17 = vector.broadcast %16 : vector<2x8x1xf32> to vector<2x8x8xf32>
    %18 = arith.subf %14, %17 : vector<2x8x8xf32>
    %19 = math.exp %18 : vector<2x8x8xf32>
    %cst_9 = arith.constant dense<0.000000e+00> : vector<2x8xf32>
    %20 = vector.multi_reduction <add>, %19, %cst_9 [2] : vector<2x8x8xf32> to vector<2x8xf32>
    %21 = vector.shape_cast %20 : vector<2x8xf32> to vector<2x8x1xf32>
    %22 = arith.truncf %19 : vector<2x8x8xf32> to vector<2x8x8xbf16>
    "tpu.trace_start"() <{level = 10 : i32, message = "hqk,khd->hqd"}> : () -> ()
    %cst_10 = arith.constant dense<0.000000e+00> : vector<2x8x16xf32>
    %23 = tpu.matmul %22, %6, %cst_10 {dimension_numbers = #tpu.dot_dimension_numbers<[2], [0], [1], [2], [0, 0, 0, 1, 1, 2], [0], [1]>} : vector<2x8x8xbf16>, vector<8x2x16xbf16>, vector<2x8x16xf32> -> vector<2x8x16xf32>
    "tpu.trace_stop"() : () -> ()
    %24 = tpu.reciprocal %21 {approx = true} : vector<2x8x1xf32> -> vector<2x8x1xf32>
    %25 = vector.broadcast %24 : vector<2x8x1xf32> to vector<2x8x16xf32>
    %26 = arith.mulf %23, %25 : vector<2x8x16xf32>
    %27 = tpu.transpose %26, [1, 0, 2] : vector<2x8x16xf32> -> vector<8x2x16xf32>
    %28 = arith.truncf %27 : vector<8x2x16xf32> to vector<8x2x16xbf16>
    %c0_11 = arith.constant 0 : index
    %c0_12 = arith.constant 0 : index
    %c0_13 = arith.constant 0 : index
    %c0_14 = arith.constant 0 : index
    %29 = vector.load %arg3[%c0_11, %c0_12, %c0_13, %c0_14] : memref<1x8x2x16xbf16, #tpu.memory_space<vmem>>, vector<1x8x2x16xbf16>
    %30 = vector.shape_cast %29 : vector<1x8x2x16xbf16> to vector<8x2x16xbf16>
    %31 = vector.shape_cast %28 : vector<8x2x16xbf16> to vector<1x8x2x16xbf16>
    tpu.vector_store %arg3[%c0_11, %c0_12, %c0_13, %c0_14], %31 {strides = array<i32>} : memref<1x8x2x16xbf16, #tpu.memory_space<vmem>>, vector<1x8x2x16xbf16>,
    return
  }
  func.func @transform_0(%arg0: i32) -> (i32, i32, i32, i32, i32) {
    %c0_i32 = arith.constant 0 : i32
    %c0_i32_0 = arith.constant 0 : i32
    %c0_i32_1 = arith.constant 0 : i32
    %c0_i32_2 = arith.constant 0 : i32
    %c0_i32_3 = arith.constant 0 : i32
    return %arg0, %c0_i32, %c0_i32_0, %c0_i32_1, %c0_i32_2 : i32, i32, i32, i32, i32
  }
  func.func @transform_1(%arg0: i32) -> (i32, i32, i32) {
    %c0_i32 = arith.constant 0 : i32
    %c0_i32_0 = arith.constant 0 : i32
    %c0_i32_1 = arith.constant 0 : i32
    return %arg0, %c0_i32, %c0_i32_0 : i32, i32, i32
  }
  func.func @transform_2(%arg0: i32) -> (i32, i32, i32, i32) {
    %c0_i32 = arith.constant 0 : i32
    %c0_i32_0 = arith.constant 0 : i32
    %c0_i32_1 = arith.constant 0 : i32
    %c0_i32_2 = arith.constant 0 : i32
    return %arg0, %c0_i32, %c0_i32_0, %c0_i32_1 : i32, i32, i32, i32
  }
}

module attributes {stable_mosaic.version = 11 : i64} {
  func.func @_linear_ln_kernel(%arg0: i32, %arg1: memref<16x32xbf16, #tpu.memory_space<vmem>>, %arg2: memref<32x32xbf16, #tpu.memory_space<vmem>>, %arg3: memref<1x32xf32, #tpu.memory_space<vmem>>, %arg4: memref<16x32xbf16, #tpu.memory_space<vmem>>, %arg5: memref<1x32xf32, #tpu.memory_space<vmem>>, %arg6: memref<1x32xf32, #tpu.memory_space<vmem>>, %arg7: memref<16x32xbf16, #tpu.memory_space<vmem>>) attributes {dimension_semantics = [#tpu.dimension_semantics<parallel>], iteration_bounds = array<i64: 1>, scalar_prefetch = 0 : i64, scratch_operands = 0 : i64, tpu.core_type = #tpu.core_type<tc>, window_params = [{transform_indices = @transform_0, window_bounds = array<i64: 16, 32>}, {pipeline_mode = #tpu.pipeline_mode<synchronous>, transform_indices = @transform_1, window_bounds = array<i64: 32, 32>}, {pipeline_mode = #tpu.pipeline_mode<synchronous>, transform_indices = @transform_2, window_bounds = array<i64: 1, 32>}, {transform_indices = @transform_3, window_bounds = array<i64: 16, 32>}, {pipeline_mode = #tpu.pipeline_mode<synchronous>, transform_indices = @transform_4, window_bounds = array<i64: 1, 32>}, {pipeline_mode = #tpu.pipeline_mode<synchronous>, transform_indices = @transform_5, window_bounds = array<i64: 1, 32>}, {transform_indices = @transform_6, window_bounds = array<i64: 16, 32>}]} {
    %c0 = arith.constant 0 : index
    %c0_0 = arith.constant 0 : index
    %0 = vector.load %arg1[%c0, %c0_0] : memref<16x32xbf16, #tpu.memory_space<vmem>>, vector<16x32xbf16>
    %c0_1 = arith.constant 0 : index
    %c0_2 = arith.constant 0 : index
    %1 = vector.load %arg2[%c0_1, %c0_2] : memref<32x32xbf16, #tpu.memory_space<vmem>>, vector<32x32xbf16>
    %cst = arith.constant dense<0.000000e+00> : vector<16x32xf32>
    %2 = tpu.matmul %0, %1, %cst {dimension_numbers = #tpu.dot_dimension_numbers<[1], [0], [0], [1], [0, 0, 1, 1], [], []>} : vector<16x32xbf16>, vector<32x32xbf16>, vector<16x32xf32> -> vector<16x32xf32>
    %c0_3 = arith.constant 0 : index
    %c0_4 = arith.constant 0 : index
    %3 = vector.load %arg3[%c0_3, %c0_4] : memref<1x32xf32, #tpu.memory_space<vmem>>, vector<1x32xf32>
    %4 = vector.broadcast %3 : vector<1x32xf32> to vector<16x32xf32>
    %5 = arith.addf %2, %4 : vector<16x32xf32>
    %c0_5 = arith.constant 0 : index
    %c0_6 = arith.constant 0 : index
    %6 = vector.load %arg4[%c0_5, %c0_6] : memref<16x32xbf16, #tpu.memory_space<vmem>>, vector<16x32xbf16>
    %7 = arith.extf %6 : vector<16x32xbf16> to vector<16x32xf32>
    %8 = arith.addf %5, %7 : vector<16x32xf32>
    %cst_7 = arith.constant dense<0.000000e+00> : vector<16xf32>
    %9 = vector.multi_reduction <add>, %8, %cst_7 [1] : vector<16x32xf32> to vector<16xf32>
    %10 = vector.shape_cast %9 : vector<16xf32> to vector<16x1xf32>
    %cst_8 = arith.constant 3.200000e+01 : f32
    %11 = vector.broadcast %cst_8 : f32 to vector<16x1xf32>
    %12 = arith.divf %10, %11 : vector<16x1xf32>
    %13 = vector.broadcast %12 : vector<16x1xf32> to vector<16x32xf32>
    %14 = arith.subf %8, %13 : vector<16x32xf32>
    %15 = arith.mulf %14, %14 : vector<16x32xf32>
    %cst_9 = arith.constant dense<0.000000e+00> : vector<16xf32>
    %16 = vector.multi_reduction <add>, %15, %cst_9 [1] : vector<16x32xf32> to vector<16xf32>
    %17 = vector.shape_cast %16 : vector<16xf32> to vector<16x1xf32>
    %cst_10 = arith.constant 3.200000e+01 : f32
    %18 = vector.broadcast %cst_10 : f32 to vector<16x1xf32>
    %19 = arith.divf %17, %18 : vector<16x1xf32>
    %20 = vector.broadcast %12 : vector<16x1xf32> to vector<16x32xf32>
    %21 = arith.subf %8, %20 : vector<16x32xf32>
    %cst_11 = arith.constant 9.99999996E-13 : f32
    %22 = vector.broadcast %cst_11 : f32 to vector<16x1xf32>
    %23 = arith.addf %19, %22 : vector<16x1xf32>
    %24 = math.rsqrt %23 : vector<16x1xf32>
    %25 = vector.broadcast %24 : vector<16x1xf32> to vector<16x32xf32>
    %26 = arith.mulf %21, %25 : vector<16x32xf32>
    %c0_12 = arith.constant 0 : index
    %c0_13 = arith.constant 0 : index
    %27 = vector.load %arg5[%c0_12, %c0_13] : memref<1x32xf32, #tpu.memory_space<vmem>>, vector<1x32xf32>
    %28 = vector.broadcast %27 : vector<1x32xf32> to vector<16x32xf32>
    %29 = arith.mulf %26, %28 : vector<16x32xf32>
    %c0_14 = arith.constant 0 : index
    %c0_15 = arith.constant 0 : index
    %30 = vector.load %arg6[%c0_14, %c0_15] : memref<1x32xf32, #tpu.memory_space<vmem>>, vector<1x32xf32>
    %31 = vector.broadcast %30 : vector<1x32xf32> to vector<16x32xf32>
    %32 = arith.addf %29, %31 : vector<16x32xf32>
    %33 = arith.truncf %32 : vector<16x32xf32> to vector<16x32xbf16>
    %c0_16 = arith.constant 0 : index
    %c0_17 = arith.constant 0 : index
    %34 = vector.load %arg7[%c0_16, %c0_17] : memref<16x32xbf16, #tpu.memory_space<vmem>>, vector<16x32xbf16>
    tpu.vector_store %arg7[%c0_16, %c0_17], %33 {strides = array<i32>} : memref<16x32xbf16, #tpu.memory_space<vmem>>, vector<16x32xbf16>,
    return
  }
  func.func @transform_0(%arg0: i32) -> (i32, i32) {
    %c0_i32 = arith.constant 0 : i32
    %c0_i32_0 = arith.constant 0 : i32
    return %arg0, %c0_i32 : i32, i32
  }
  func.func @transform_1(%arg0: i32) -> (i32, i32) {
    %c0_i32 = arith.constant 0 : i32
    %c0_i32_0 = arith.constant 0 : i32
    %c0_i32_1 = arith.constant 0 : i32
    return %c0_i32, %c0_i32_0 : i32, i32
  }
  func.func @transform_2(%arg0: i32) -> (i32, i32) {
    %c0_i32 = arith.constant 0 : i32
    %c0_i32_0 = arith.constant 0 : i32
    %c0_i32_1 = arith.constant 0 : i32
    return %c0_i32, %c0_i32_0 : i32, i32
  }
  func.func @transform_3(%arg0: i32) -> (i32, i32) {
    %c0_i32 = arith.constant 0 : i32
    %c0_i32_0 = arith.constant 0 : i32
    return %arg0, %c0_i32 : i32, i32
  }
  func.func @transform_4(%arg0: i32) -> (i32, i32) {
    %c0_i32 = arith.constant 0 : i32
    %c0_i32_0 = arith.constant 0 : i32
    %c0_i32_1 = arith.constant 0 : i32
    return %c0_i32, %c0_i32_0 : i32, i32
  }
  func.func @transform_5(%arg0: i32) -> (i32, i32) {
    %c0_i32 = arith.constant 0 : i32
    %c0_i32_0 = arith.constant 0 : i32
    %c0_i32_1 = arith.constant 0 : i32
    return %c0_i32, %c0_i32_0 : i32, i32
  }
  func.func @transform_6(%arg0: i32) -> (i32, i32) {
    %c0_i32 = arith.constant 0 : i32
    %c0_i32_0 = arith.constant 0 : i32
    return %arg0, %c0_i32 : i32, i32
  }
}

module attributes {stable_mosaic.version = 11 : i64} {
  func.func @_linear_kernel(%arg0: i32, %arg1: i32, %arg2: memref<16x32xbf16, #tpu.memory_space<vmem>>, %arg3: memref<32x64xbf16, #tpu.memory_space<vmem>>, %arg4: memref<1x64xf32, #tpu.memory_space<vmem>>, %arg5: memref<16x64xbf16, #tpu.memory_space<vmem>>) attributes {dimension_semantics = [#tpu.dimension_semantics<parallel>, #tpu.dimension_semantics<parallel>], iteration_bounds = array<i64: 1, 1>, scalar_prefetch = 0 : i64, scratch_operands = 0 : i64, tpu.core_type = #tpu.core_type<tc>, window_params = [{transform_indices = @transform_0, window_bounds = array<i64: 16, 32>}, {transform_indices = @transform_1, window_bounds = array<i64: 32, 64>}, {transform_indices = @transform_2, window_bounds = array<i64: 1, 64>}, {transform_indices = @transform_3, window_bounds = array<i64: 16, 64>}]} {
    %c0 = arith.constant 0 : index
    %c0_0 = arith.constant 0 : index
    %0 = vector.load %arg2[%c0, %c0_0] : memref<16x32xbf16, #tpu.memory_space<vmem>>, vector<16x32xbf16>
    %c0_1 = arith.constant 0 : index
    %c0_2 = arith.constant 0 : index
    %1 = vector.load %arg3[%c0_1, %c0_2] : memref<32x64xbf16, #tpu.memory_space<vmem>>, vector<32x64xbf16>
    %cst = arith.constant dense<0.000000e+00> : vector<16x64xf32>
    %2 = tpu.matmul %0, %1, %cst {dimension_numbers = #tpu.dot_dimension_numbers<[1], [0], [0], [1], [0, 0, 1, 1], [], []>} : vector<16x32xbf16>, vector<32x64xbf16>, vector<16x64xf32> -> vector<16x64xf32>
    %c0_3 = arith.constant 0 : index
    %c0_4 = arith.constant 0 : index
    %3 = vector.load %arg4[%c0_3, %c0_4] : memref<1x64xf32, #tpu.memory_space<vmem>>, vector<1x64xf32>
    %4 = vector.broadcast %3 : vector<1x64xf32> to vector<16x64xf32>
    %5 = arith.addf %2, %4 : vector<16x64xf32>
    %cst_5 = arith.constant 5.000000e-01 : f32
    %6 = vector.broadcast %cst_5 : f32 to vector<16x64xf32>
    %7 = arith.mulf %6, %5 : vector<16x64xf32>
    %cst_6 = arith.constant 4.471500e-02 : f32
    %8 = vector.broadcast %cst_6 : f32 to vector<16x64xf32>
    %9 = arith.mulf %8, %5 : vector<16x64xf32>
    %10 = arith.mulf %9, %5 : vector<16x64xf32>
    %11 = arith.mulf %10, %5 : vector<16x64xf32>
    %12 = arith.addf %5, %11 : vector<16x64xf32>
    %cst_7 = arith.constant 0.797884583 : f32
    %13 = vector.broadcast %cst_7 : f32 to vector<16x64xf32>
    %14 = arith.mulf %13, %12 : vector<16x64xf32>
    %15 = math.tanh %14 : vector<16x64xf32>
    %cst_8 = arith.constant 1.000000e+00 : f32
    %16 = vector.broadcast %cst_8 : f32 to vector<16x64xf32>
    %17 = arith.addf %16, %15 : vector<16x64xf32>
    %18 = arith.mulf %7, %17 : vector<16x64xf32>
    %19 = arith.truncf %18 : vector<16x64xf32> to vector<16x64xbf16>
    %c0_9 = arith.constant 0 : index
    %c0_10 = arith.constant 0 : index
    %20 = vector.load %arg5[%c0_9, %c0_10] : memref<16x64xbf16, #tpu.memory_space<vmem>>, vector<16x64xbf16>
    tpu.vector_store %arg5[%c0_9, %c0_10], %19 {strides = array<i32>} : memref<16x64xbf16, #tpu.memory_space<vmem>>, vector<16x64xbf16>,
    return
  }
  func.func @transform_0(%arg0: i32, %arg1: i32) -> (i32, i32) {
    %c0_i32 = arith.constant 0 : i32
    %c0_i32_0 = arith.constant 0 : i32
    return %arg0, %c0_i32 : i32, i32
  }
  func.func @transform_1(%arg0: i32, %arg1: i32) -> (i32, i32) {
    %c0_i32 = arith.constant 0 : i32
    %c0_i32_0 = arith.constant 0 : i32
    return %c0_i32, %arg1 : i32, i32
  }
  func.func @transform_2(%arg0: i32, %arg1: i32) -> (i32, i32) {
    %c0_i32 = arith.constant 0 : i32
    %c0_i32_0 = arith.constant 0 : i32
    return %c0_i32, %arg1 : i32, i32
  }
  func.func @transform_3(%arg0: i32, %arg1: i32) -> (i32, i32) {
    %c0_i32 = arith.constant 0 : i32
    return %arg0, %arg1 : i32, i32
  }
}

module attributes {stable_mosaic.version = 11 : i64} {
  func.func @_pooler_classifier_kernel(%arg0: memref<2x32xbf16, #tpu.memory_space<vmem>>, %arg1: memref<32x32xbf16, #tpu.memory_space<vmem>>, %arg2: memref<1x32xf32, #tpu.memory_space<vmem>>, %arg3: memref<32x2xbf16, #tpu.memory_space<vmem>>, %arg4: memref<1x2xf32, #tpu.memory_space<vmem>>, %arg5: memref<2x2xf32, #tpu.memory_space<vmem>>) attributes {dimension_semantics = [], scalar_prefetch = 0 : i64, scratch_operands = 0 : i64, tpu.core_type = #tpu.core_type<tc>} {
    %c0 = arith.constant 0 : index
    %c0_0 = arith.constant 0 : index
    %0 = vector.load %arg0[%c0, %c0_0] : memref<2x32xbf16, #tpu.memory_space<vmem>>, vector<2x32xbf16>
    %c0_1 = arith.constant 0 : index
    %c0_2 = arith.constant 0 : index
    %1 = vector.load %arg1[%c0_1, %c0_2] : memref<32x32xbf16, #tpu.memory_space<vmem>>, vector<32x32xbf16>
    %cst = arith.constant dense<0.000000e+00> : vector<2x32xf32>
    %2 = tpu.matmul %0, %1, %cst {dimension_numbers = #tpu.dot_dimension_numbers<[1], [0], [0], [1], [0, 0, 1, 1], [], []>} : vector<2x32xbf16>, vector<32x32xbf16>, vector<2x32xf32> -> vector<2x32xf32>
    %c0_3 = arith.constant 0 : index
    %c0_4 = arith.constant 0 : index
    %3 = vector.load %arg2[%c0_3, %c0_4] : memref<1x32xf32, #tpu.memory_space<vmem>>, vector<1x32xf32>
    %4 = vector.broadcast %3 : vector<1x32xf32> to vector<2x32xf32>
    %5 = arith.addf %2, %4 : vector<2x32xf32>
    %6 = math.tanh %5 : vector<2x32xf32>
    %7 = arith.truncf %6 : vector<2x32xf32> to vector<2x32xbf16>
    %c0_5 = arith.constant 0 : index
    %c0_6 = arith.constant 0 : index
    %8 = vector.load %arg3[%c0_5, %c0_6] : memref<32x2xbf16, #tpu.memory_space<vmem>>, vector<32x2xbf16>
    %cst_7 = arith.constant dense<0.000000e+00> : vector<2x2xf32>
    %9 = tpu.matmul %7, %8, %cst_7 {dimension_numbers = #tpu.dot_dimension_numbers<[1], [0], [0], [1], [0, 0, 1, 1], [], []>} : vector<2x32xbf16>, vector<32x2xbf16>, vector<2x2xf32> -> vector<2x2xf32>
    %c0_8 = arith.constant 0 : index
    %c0_9 = arith.constant 0 : index
    %10 = vector.load %arg4[%c0_8, %c0_9] : memref<1x2xf32, #tpu.memory_space<vmem>>, vector<1x2xf32>
    %11 = vector.broadcast %10 : vector<1x2xf32> to vector<2x2xf32>
    %12 = arith.addf %9, %11 : vector<2x2xf32>
    %c0_10 = arith.constant 0 : index
    %c0_11 = arith.constant 0 : index
    %13 = vector.load %arg5[%c0_10, %c0_11] : memref<2x2xf32, #tpu.memory_space<vmem>>, vector<2x2xf32>
    tpu.vector_store %arg5[%c0_10, %c0_11], %12 {strides = array<i32>} : memref<2x2xf32, #tpu.memory_space<vmem>>, vector<2x2xf32>,
    return
  }
}

module attributes {stable_mosaic.version = 11 : i64} {
  func.func @_linear_ln_kernel(%arg0: i32, %arg1: memref<16x64xbf16, #tpu.memory_space<vmem>>, %arg2: memref<64x32xbf16, #tpu.memory_space<vmem>>, %arg3: memref<1x32xf32, #tpu.memory_space<vmem>>, %arg4: memref<16x32xbf16, #tpu.memory_space<vmem>>, %arg5: memref<1x32xf32, #tpu.memory_space<vmem>>, %arg6: memref<1x32xf32, #tpu.memory_space<vmem>>, %arg7: memref<16x32xbf16, #tpu.memory_space<vmem>>) attributes {dimension_semantics = [#tpu.dimension_semantics<parallel>], iteration_bounds = array<i64: 1>, scalar_prefetch = 0 : i64, scratch_operands = 0 : i64, tpu.core_type = #tpu.core_type<tc>, window_params = [{transform_indices = @transform_0, window_bounds = array<i64: 16, 64>}, {pipeline_mode = #tpu.pipeline_mode<synchronous>, transform_indices = @transform_1, window_bounds = array<i64: 64, 32>}, {pipeline_mode = #tpu.pipeline_mode<synchronous>, transform_indices = @transform_2, window_bounds = array<i64: 1, 32>}, {transform_indices = @transform_3, window_bounds = array<i64: 16, 32>}, {pipeline_mode = #tpu.pipeline_mode<synchronous>, transform_indices = @transform_4, window_bounds = array<i64: 1, 32>}, {pipeline_mode = #tpu.pipeline_mode<synchronous>, transform_indices = @transform_5, window_bounds = array<i64: 1, 32>}, {transform_indices = @transform_6, window_bounds = array<i64: 16, 32>}]} {
    %c0 = arith.constant 0 : index
    %c0_0 = arith.constant 0 : index
    %0 = vector.load %arg1[%c0, %c0_0] : memref<16x64xbf16, #tpu.memory_space<vmem>>, vector<16x64xbf16>
    %c0_1 = arith.constant 0 : index
    %c0_2 = arith.constant 0 : index
    %1 = vector.load %arg2[%c0_1, %c0_2] : memref<64x32xbf16, #tpu.memory_space<vmem>>, vector<64x32xbf16>
    %cst = arith.constant dense<0.000000e+00> : vector<16x32xf32>
    %2 = tpu.matmul %0, %1, %cst {dimension_numbers = #tpu.dot_dimension_numbers<[1], [0], [0], [1], [0, 0, 1, 1], [], []>} : vector<16x64xbf16>, vector<64x32xbf16>, vector<16x32xf32> -> vector<16x32xf32>
    %c0_3 = arith.constant 0 : index
    %c0_4 = arith.constant 0 : index
    %3 = vector.load %arg3[%c0_3, %c0_4] : memref<1x32xf32, #tpu.memory_space<vmem>>, vector<1x32xf32>
    %4 = vector.broadcast %3 : vector<1x32xf32> to vector<16x32xf32>
    %5 = arith.addf %2, %4 : vector<16x32xf32>
    %c0_5 = arith.constant 0 : index
    %c0_6 = arith.constant 0 : index
    %6 = vector.load %arg4[%c0_5, %c0_6] : memref<16x32xbf16, #tpu.memory_space<vmem>>, vector<16x32xbf16>
    %7 = arith.extf %6 : vector<16x32xbf16> to vector<16x32xf32>
    %8 = arith.addf %5, %7 : vector<16x32xf32>
    %cst_7 = arith.constant dense<0.000000e+00> : vector<16xf32>
    %9 = vector.multi_reduction <add>, %8, %cst_7 [1] : vector<16x32xf32> to vector<16xf32>
    %10 = vector.shape_cast %9 : vector<16xf32> to vector<16x1xf32>
    %cst_8 = arith.constant 3.200000e+01 : f32
    %11 = vector.broadcast %cst_8 : f32 to vector<16x1xf32>
    %12 = arith.divf %10, %11 : vector<16x1xf32>
    %13 = vector.broadcast %12 : vector<16x1xf32> to vector<16x32xf32>
    %14 = arith.subf %8, %13 : vector<16x32xf32>
    %15 = arith.mulf %14, %14 : vector<16x32xf32>
    %cst_9 = arith.constant dense<0.000000e+00> : vector<16xf32>
    %16 = vector.multi_reduction <add>, %15, %cst_9 [1] : vector<16x32xf32> to vector<16xf32>
    %17 = vector.shape_cast %16 : vector<16xf32> to vector<16x1xf32>
    %cst_10 = arith.constant 3.200000e+01 : f32
    %18 = vector.broadcast %cst_10 : f32 to vector<16x1xf32>
    %19 = arith.divf %17, %18 : vector<16x1xf32>
    %20 = vector.broadcast %12 : vector<16x1xf32> to vector<16x32xf32>
    %21 = arith.subf %8, %20 : vector<16x32xf32>
    %cst_11 = arith.constant 9.99999996E-13 : f32
    %22 = vector.broadcast %cst_11 : f32 to vector<16x1xf32>
    %23 = arith.addf %19, %22 : vector<16x1xf32>
    %24 = math.rsqrt %23 : vector<16x1xf32>
    %25 = vector.broadcast %24 : vector<16x1xf32> to vector<16x32xf32>
    %26 = arith.mulf %21, %25 : vector<16x32xf32>
    %c0_12 = arith.constant 0 : index
    %c0_13 = arith.constant 0 : index
    %27 = vector.load %arg5[%c0_12, %c0_13] : memref<1x32xf32, #tpu.memory_space<vmem>>, vector<1x32xf32>
    %28 = vector.broadcast %27 : vector<1x32xf32> to vector<16x32xf32>
    %29 = arith.mulf %26, %28 : vector<16x32xf32>
    %c0_14 = arith.constant 0 : index
    %c0_15 = arith.constant 0 : index
    %30 = vector.load %arg6[%c0_14, %c0_15] : memref<1x32xf32, #tpu.memory_space<vmem>>, vector<1x32xf32>
    %31 = vector.broadcast %30 : vector<1x32xf32> to vector<16x32xf32>
    %32 = arith.addf %29, %31 : vector<16x32xf32>
    %33 = arith.truncf %32 : vector<16x32xf32> to vector<16x32xbf16>
    %c0_16 = arith.constant 0 : index
    %c0_17 = arith.constant 0 : index
    %34 = vector.load %arg7[%c0_16, %c0_17] : memref<16x32xbf16, #tpu.memory_space<vmem>>, vector<16x32xbf16>
    tpu.vector_store %arg7[%c0_16, %c0_17], %33 {strides = array<i32>} : memref<16x32xbf16, #tpu.memory_space<vmem>>, vector<16x32xbf16>,
    return
  }
  func.func @transform_0(%arg0: i32) -> (i32, i32) {
    %c0_i32 = arith.constant 0 : i32
    %c0_i32_0 = arith.constant 0 : i32
    return %arg0, %c0_i32 : i32, i32
  }
  func.func @transform_1(%arg0: i32) -> (i32, i32) {
    %c0_i32 = arith.constant 0 : i32
    %c0_i32_0 = arith.constant 0 : i32
    %c0_i32_1 = arith.constant 0 : i32
    return %c0_i32, %c0_i32_0 : i32, i32
  }
  func.func @transform_2(%arg0: i32) -> (i32, i32) {
    %c0_i32 = arith.constant 0 : i32
    %c0_i32_0 = arith.constant 0 : i32
    %c0_i32_1 = arith.constant 0 : i32
    return %c0_i32, %c0_i32_0 : i32, i32
  }
  func.func @transform_3(%arg0: i32) -> (i32, i32) {
    %c0_i32 = arith.constant 0 : i32
    %c0_i32_0 = arith.constant 0 : i32
    return %arg0, %c0_i32 : i32, i32
  }
  func.func @transform_4(%arg0: i32) -> (i32, i32) {
    %c0_i32 = arith.constant 0 : i32
    %c0_i32_0 = arith.constant 0 : i32
    %c0_i32_1 = arith.constant 0 : i32
    return %c0_i32, %c0_i32_0 : i32, i32
  }
  func.func @transform_5(%arg0: i32) -> (i32, i32) {
    %c0_i32 = arith.constant 0 : i32
    %c0_i32_0 = arith.constant 0 : i32
    %c0_i32_1 = arith.constant 0 : i32
    return %c0_i32, %c0_i32_0 : i32, i32
  }
  func.func @transform_6(%arg0: i32) -> (i32, i32) {
    %c0_i32 = arith.constant 0 : i32
    %c0_i32_0 = arith.constant 0 : i32
    return %arg0, %c0_i32 : i32, i32
  }
}

</mosaic_0001>

<bundles_post_ra>
// kernel: bert_classifier_forward.13
= control target key start
LH: loop header
LB: loop body
LE: loop exit
PB: predicated region body
PF: predicated region fallthrough
CT: control target
= control target key end

     0   :  { %v130_v0 = vmov 0.0   ;;  %vm131_vm0 = vmmov 0   ;;  %vm45_vm1 = vcmask 261120   ;;  %vm98_vm2 = vcmask 781312   ;;  %s170_s1 = inlined_call_operand.vmem [shape: bf16[32,96], index: 1, kind: input, shape index: {}]   ;;  %s171_s0 = inlined_call_operand.vmem [shape: bf16[16,32], index: 0, kind: input, shape index: {}]   ;;  %s172_s2 = inlined_call_operand.vmem [shape: f32[1,96], index: 2, kind: input, shape index: {}]   ;;  %s173_s3 = inlined_call_operand.vmem [shape: bf16[16,96], index: 3, kind: output, shape index: {}]  }
   0x1   :  { %117 = vmatprep.subr.bf16.mxu0 %v130_v0  ;;  %v127_v1 = vld [vmem:[%s170_s1 + $0x8] sm:$0xff]   ;;  %121 = vmatprep.mubr.msk.bf16.mxu0 %vm131_vm0, %v130_v0  ;;  %v128_v2 = vld [vmem:[%s170_s1] sm:$0xff]  }
   0x2   :  { %118 = vmatpush3.bf16.msra.mxu0 %v127_v1  ;;  %v129_v3 = vld [vmem:[%s171_s0] sm:$0xff]  }
   0x3   :  { %119 = vmatprep.subr.bf16.mxu0 %v130_v0  ;;  %v105_v4 = vld [vmem:[%s172_s2] ss:$0 sm:$0xff] }
   0x6   :  { %120 = vmatpush3.bf16.msra.mxu0 %v128_v2 }
   0x9   :  { %122 = vmatmul.mubr.msk.bf16.vlgmr.msra.gmra.mxu0 %vm45_vm1, %v129_v3 }
  0xc9   :  { %v83_v5 = vpop.f32.mrf.mxu0 }
  0xca   :  { %v84_v6 = vadd.f32 %v105_v4, %v83_v5 }
  0xcb   :  { %v123_v7 = vpop.f32.mrf.mxu0 }
  0xcc   :  { %v112_v8 = vpack.c.bf16 %v84_v6, %v84_v6 }
  0xcd   :  { %v86_v9 = vpop.f32.mrf.mxu0 }
  0xce   :  { %99 = vst.msk [vmem:[%s173_s3] sm:$0xf] %vm98_vm2, %v112_v8  ;;  %v87_v10 = vadd.f32 %v105_v4, %v86_v9 }
  0xcf   :  { %v124_v11 = vpop.f32.mrf.mxu0 }
  0xd0   :  { %v113_v12 = vpack.c.bf16 %v87_v10, %v87_v10 }
  0xd2   :  { %100 = vst.msk [vmem:[%s173_s3 + $0x4] sm:$0xf] %vm98_vm2, %v113_v12 }

// kernel: bert_classifier_forward.15
= control target key start
LH: loop header
LB: loop body
LE: loop exit
PB: predicated region body
PF: predicated region fallthrough
CT: control target
= control target key end

     0   :  { %v200_v0 = vmov 0.0   ;;  %vm201_vm0 = vmmov 0   ;;  %vm54_vm1 = vcmask 261120   ;;  %vm158_vm2 = vcmask 257024   ;;  %s269_s1 = inlined_call_operand.vmem [shape: bf16[32,32], index: 1, kind: input, shape index: {}]   ;;  %s270_s0 = inlined_call_operand.vmem [shape: bf16[16,32], index: 0, kind: input, shape index: {}]   ;;  %s271_s3 = inlined_call_operand.vmem [shape: bf16[16,32], index: 3, kind: input, shape index: {}]   ;;  %s272_s2 = inlined_call_operand.vmem [shape: f32[1,32], index: 2, kind: input, shape index: {}]   ;;  %s273_s4 = inlined_call_operand.vmem [shape: f32[1,32], index: 4, kind: input, shape index: {}]   ;;  %s274_s5 = inlined_call_operand.vmem [shape: f32[1,32], index: 5, kind: input, shape index: {}]   ;;  %s275_s6 = inlined_call_operand.vmem [shape: bf16[16,32], index: 6, kind: output, shape index: {}]  }
   0x1   :  { %183 = vmatprep.subr.bf16.mxu0 %v200_v0  ;;  %v193_v1 = vld [vmem:[%s269_s1 + $0x8] sm:$0xff]   ;;  %187 = vmatprep.mubr.msk.bf16.mxu0 %vm201_vm0, %v200_v0  ;;  %v194_v2 = vld [vmem:[%s269_s1] sm:$0xff]  }
   0x2   :  { %184 = vmatpush3.bf16.msra.mxu0 %v193_v1  ;;  %v195_v3 = vld [vmem:[%s270_s0] sm:$0xff]  }
   0x3   :  { %185 = vmatprep.subr.bf16.mxu0 %v200_v0  ;;  %v177_v4 = vld [vmem:[%s271_s3] sm:$0xff]  }
   0x4   :  { %v165_v5 = vld [vmem:[%s272_s2] ss:$0 sm:$0xff]  ;;  %v178_v6 = vunpack.c.l.bf16 %v177_v4  ;;  %v179_v11 = vunpack.c.h.bf16 %v177_v4 }
   0x5   :  { %v170_v35 = vld [vmem:[%s273_s4] ss:$0 sm:$0xff] }
   0x6   :  { %186 = vmatpush3.bf16.msra.mxu0 %v194_v2  ;;  %v171_v37 = vld [vmem:[%s274_s5] ss:$0 sm:$0xff] }
   0x9   :  { %188 = vmatmul.mubr.msk.bf16.vlgmr.msra.gmra.mxu0 %vm54_vm1, %v195_v3 }
  0xc9   :  { %v92_v7 = vpop.f32.mrf.mxu0 }
  0xca   :  { %v93_v8 = vadd.f32 %v165_v5, %v92_v7 }
  0xcb   :  { %v189_v9 = vpop.f32.mrf.mxu0 }
  0xcc   :  { %v103_v10 = vadd.f32 %v178_v6, %v93_v8 }
  0xcd   :  { %v95_v12 = vpop.f32.mrf.mxu0 }
  0xce   :  { %v96_v13 = vadd.f32 %v165_v5, %v95_v12  ;;  %v105_v14 = vsel %vm54_vm1, %v103_v10, 0.0 }
  0xcf   :  { %106 = vadd.xlane.f32.xlu0 %v105_v14  ;;  %v190_v15 = vpop.f32.mrf.mxu0 }
  0xd0   :  { %v104_v16 = vadd.f32 %v179_v11, %v96_v13 }
  0xd2   :  { %v108_v17 = vsel %vm54_vm1, %v104_v16, 0.0 }
  0xd3   :  { %109 = vadd.xlane.f32.xlu0 %v108_v17 }
 0x158   :  { %v107_v18 = vpop.xlane.xlu0 %106 }
 0x159   :  { %v112_v19 = vmul.f32 0.03125, %v107_v18 }
 0x15b   :  { %v114_v20 = vsub.f32 %v103_v10, %v112_v19 }
 0x15c   :  { %v110_v21 = vpop.xlane.xlu0 %109 }
 0x15d   :  { %v113_v22 = vmul.f32 0.03125, %v110_v21  ;;  %v116_v23 = vmul.f32 %v114_v20, %v114_v20 }
 0x15f   :  { %v115_v24 = vsub.f32 %v104_v16, %v113_v22  ;;  %v118_v25 = vsel %vm54_vm1, %v116_v23, 0.0 }
 0x160   :  { %119 = vadd.xlane.f32.xlu1 %v118_v25 }
 0x161   :  { %v117_v26 = vmul.f32 %v115_v24, %v115_v24 }
 0x163   :  { %v121_v27 = vsel %vm54_vm1, %v117_v26, 0.0 }
 0x164   :  { %122 = vadd.xlane.f32.xlu1 %v121_v27 }
 0x1e9   :  { %v120_v28 = vpop.xlane.xlu1 %119 }
 0x1ea   :  { %v124_v29 = vmul.f32 0.03125, %v120_v28 }
 0x1ec   :  { %v126_v30 = vadd.f32 1e-12, %v124_v29 }
 0x1ed   :  { %v123_v31 = vpop.xlane.xlu1 %122 }
 0x1ee   :  { %196 = vrsqrt.f32 %v126_v30  ;;  %v125_v32 = vmul.f32 0.03125, %v123_v31 }
 0x1f0   :  { %v127_v33 = vadd.f32 1e-12, %v125_v32 }
 0x1f2   :  { %198 = vrsqrt.f32 %v127_v33 }
 0x1fb   :  { %v197_v34 = vpop.eup %196 }
 0x1fc   :  { %v130_v36 = vmul.f32 %v197_v34, %v114_v20 }
 0x1fe   :  { %v139_v38 = vmul.f32 %v170_v35, %v130_v36 }
 0x1ff   :  { %v199_v39 = vpop.eup %198 }
 0x200   :  { %v148_v40 = vadd.f32 %v171_v37, %v139_v38  ;;  %v131_v41 = vmul.f32 %v199_v39, %v115_v24 }
 0x202   :  { %v174_v42 = vpack.c.bf16 %v148_v40, %v148_v40  ;;  %v140_v43 = vmul.f32 %v170_v35, %v131_v41 }
 0x204   :  { %159 = vst.msk [vmem:[%s275_s6] sm:$0xf] %vm158_vm2, %v174_v42  ;;  %v149_v44 = vadd.f32 %v171_v37, %v140_v43 }
 0x206   :  { %v175_v45 = vpack.c.bf16 %v149_v44, %v149_v44 }
 0x208   :  { %160 = vst.msk [vmem:[%s275_s6 + $0x4] sm:$0xf] %vm158_vm2, %v175_v45 }

// kernel: bert_classifier_forward.12
= control target key start
LH: loop header
LB: loop body
LE: loop exit
PB: predicated region body
PF: predicated region fallthrough
CT: control target
= control target key end

     0   :  { %vm16_vm0 = vcmask 261120   ;;  %vm70_vm1 = vcmask 257024   ;;  %s129_s0 = inlined_call_operand.vmem [shape: f32[16,32], index: 0, kind: input, shape index: {}]   ;;  %s130_s1 = inlined_call_operand.vmem [shape: f32[1,32], index: 1, kind: input, shape index: {}]   ;;  %s131_s2 = inlined_call_operand.vmem [shape: f32[1,32], index: 2, kind: input, shape index: {}]   ;;  %s132_s3 = inlined_call_operand.vmem [shape: bf16[16,32], index: 3, kind: output, shape index: {}]  }
   0x1   :  { %v14_v0 = vld [vmem:[%s129_s0] sm:$0xff]  ;;  %v15_v1 = vld [vmem:[%s129_s0 + $0x8] sm:$0xff] }
   0x2   :  { %v17_v2 = vsel %vm16_vm0, %v14_v0, 0.0  ;;  %v20_v3 = vsel %vm16_vm0, %v15_v1, 0.0  ;;  %v77_v21 = vld [vmem:[%s130_s1] ss:$0 sm:$0xff] }
   0x3   :  { %18 = vadd.xlane.f32.xlu0 %v17_v2  ;;  %v78_v23 = vld [vmem:[%s131_s2] ss:$0 sm:$0xff] }
   0x7   :  { %21 = vadd.xlane.f32.xlu0 %v20_v3 }
  0x8c   :  { %v19_v4 = vpop.xlane.xlu0 %18 }
  0x8d   :  { %v24_v5 = vmul.f32 0.03125, %v19_v4 }
  0x8f   :  { %v26_v6 = vsub.f32 %v14_v0, %v24_v5 }
  0x90   :  { %v22_v7 = vpop.xlane.xlu0 %21 }
  0x91   :  { %v25_v8 = vmul.f32 0.03125, %v22_v7  ;;  %v28_v9 = vmul.f32 %v26_v6, %v26_v6 }
  0x93   :  { %v27_v10 = vsub.f32 %v15_v1, %v25_v8  ;;  %v30_v11 = vsel %vm16_vm0, %v28_v9, 0.0 }
  0x94   :  { %31 = vadd.xlane.f32.xlu1 %v30_v11 }
  0x95   :  { %v29_v12 = vmul.f32 %v27_v10, %v27_v10 }
  0x97   :  { %v33_v13 = vsel %vm16_vm0, %v29_v12, 0.0 }
  0x98   :  { %34 = vadd.xlane.f32.xlu1 %v33_v13 }
 0x11d   :  { %v32_v14 = vpop.xlane.xlu1 %31 }
 0x11e   :  { %v36_v15 = vmul.f32 0.03125, %v32_v14 }
 0x120   :  { %v38_v16 = vadd.f32 1e-12, %v36_v15 }
 0x121   :  { %v35_v17 = vpop.xlane.xlu1 %34 }
 0x122   :  { %83 = vrsqrt.f32 %v38_v16  ;;  %v37_v18 = vmul.f32 0.03125, %v35_v17 }
 0x124   :  { %v39_v19 = vadd.f32 1e-12, %v37_v18 }
 0x126   :  { %85 = vrsqrt.f32 %v39_v19 }
 0x12f   :  { %v84_v20 = vpop.eup %83 }
 0x130   :  { %v42_v22 = vmul.f32 %v84_v20, %v26_v6 }
 0x132   :  { %v51_v24 = vmul.f32 %v77_v21, %v42_v22 }
 0x133   :  { %v86_v25 = vpop.eup %85 }
 0x134   :  { %v60_v26 = vadd.f32 %v78_v23, %v51_v24  ;;  %v43_v27 = vmul.f32 %v86_v25, %v27_v10 }
 0x136   :  { %v81_v28 = vpack.c.bf16 %v60_v26, %v60_v26  ;;  %v52_v29 = vmul.f32 %v77_v21, %v43_v27 }
 0x138   :  { %71 = vst.msk [vmem:[%s132_s3] sm:$0xf] %vm70_vm1, %v81_v28  ;;  %v61_v30 = vadd.f32 %v78_v23, %v52_v29 }
 0x13a   :  { %v82_v31 = vpack.c.bf16 %v61_v30, %v61_v30 }
 0x13c   :  { %72 = vst.msk [vmem:[%s132_s3 + $0x4] sm:$0xf] %vm70_vm1, %v82_v31 }

// kernel: bert_classifier_forward.14
= control target key start
LH: loop header
LB: loop body
LE: loop exit
PB: predicated region body
PF: predicated region fallthrough
CT: control target
= control target key end

     0   :  { %s1438_s9 = smov 0   ;;  %s1580_s0 = inlined_call_operand.vmem [shape: bf16[2,8,3,2,16], index: 0, kind: input, shape index: {}]   ;;  %s1581_s1 = inlined_call_operand.vmem [shape: f32[2,1,8], index: 1, kind: input, shape index: {}]   ;;  %s1582_s2 = inlined_call_operand.vmem [shape: bf16[2,8,2,16], index: 2, kind: output, shape index: {}]  }
   0x1 LB: > { %s1341_s10 = sadd.s32 4294967295, %s1415_s9   ;;  %p1345_p0 = scmp.ge.s32.totalorder %s1415_s9, 1  ;;  %s1415_s9 = sphi %s1438_s9, %s12_s9  }
   0x2   : > { %p119_p1 = scmp.lt.s32.totalorder %s1415_s9, 3 }
   0x4   : > { %p120_p2 = pnand %p1345_p0, %p119_p1 }
   0x5   : > { %p142_p3 = scmp.lt.s32.totalorder (!%p120_p2), %s1341_s10, 1 }
   0x6   : > { %123 = sbr.rel (%p120_p2) target bundleno = 847 (0x34f), region = 28 }
   0xb   : > { %s1584_s10 = smov (!%p142_p3, %s1341_s10), 1  ;;  %v1417_v12 = vmov 1983009808   ;;  %v367_v14 = vlaneseq  ;;  %v1418_v15 = vmov 1934713408   ;;  %vm1421_vm0 = vmmov 0  }
   0xc   : > { %s1386_s11 = smul.u32 24, %s1584_s10  ;;  %v365_v13 = vunpack.c.l.s4 %v1417_v12  ;;  %v397_v16 = vunpack.c.l.s4 %v1418_v15  ;;  %vm884_vm1 = vcmask 130048   ;;  %s148_s17 = scalar_lea.vmem %s1581_s1, %s1584_s10  ;;  %vm1006_vm2 = vcmask 64512  }
   0xd   : > { %v1462_v20 = vshrl.u32 %v367_v14, 7  ;;  %vm1078_vm3 = vcmask 1043456   ;;  %s1346_s18 = sshll.u32 %s1584_s10, 3  ;;  %vm1270_vm4 = vcmask 122880  }
   0xe   : > { %s1452_s14 = scalar_lea.vmem %s1580_s0, %s1386_s11  ;;  %v366_v19 = vunpack.c.0.s8 %v365_v13  ;;  %v398_v26 = vunpack.c.0.s8 %v397_v16  ;;  %s152_s21 = scalar_lea.vmem %s1582_s2, %s1346_s18 }
   0xf   : > { %v161_v0 = vld [vmem:[%s1452_s14 + $0x7] sm:$0x1]  ;;  %v155_v1 = vld [vmem:[%s1452_s14 + $0x1] sm:$0x1]  ;;  %v164_v2 = vld [vmem:[%s1452_s14 + $0xa] sm:$0x1] }
  0x10   : > { %234 = vxpose.xlu1.c.b16.start.end [1/1] (short) (narrow) %v161_v0, 16  ;;  %202 = vxpose.xlu0.c.b16.start.end [1/1] (short) (narrow) %v155_v1, 16  ;;  %v158_v3 = vld [vmem:[%s1452_s14 + $0x4] sm:$0x1]  ;;  %v170_v4 = vld [vmem:[%s1452_s14 + $0x10] sm:$0x1]  ;;  %v1465_v32 = vsub.s32 %v366_v19, %v1462_v20  ;;  %v1470_v47 = vsub.s32 %v398_v26, %v1462_v20 }
  0x11   : > { %v167_v5 = vld [vmem:[%s1452_s14 + $0xd] sm:$0x1]  ;;  %v176_v6 = vld [vmem:[%s1452_s14 + $0x16] sm:$0x1]  ;;  %v173_v7 = vld [vmem:[%s1452_s14 + $0x13] sm:$0x1] }
  0x14   : > { %250 = vxpose.xlu1.c.b16.start.end [1/1] (short) (narrow) %v164_v2, 16  ;;  %218 = vxpose.xlu0.c.b16.start.end [1/1] (short) (narrow) %v158_v3, 16 }
  0x18   : > { %282 = vxpose.xlu1.c.b16.start.end [1/1] (short) (narrow) %v170_v4, 16  ;;  %266 = vxpose.xlu0.c.b16.start.end [1/1] (short) (narrow) %v167_v5, 16 }
  0x1c   : > { %314 = vxpose.xlu1.c.b16.start.end [1/1] (short) (narrow) %v176_v6, 16  ;;  %298 = vxpose.xlu0.c.b16.start.end [1/1] (short) (narrow) %v173_v7, 16  ;;  %v1419_v6 = vmov 0.0  }
  0x1d   : > { %1362 = vmatprep.subr.bf16.mxu0 %v1419_v6  ;;  %1368 = vmatprep.subr.bf16.mxu1 %v1419_v6 }
  0x1e   : > { %1364 = vmatprep.mubr.msk.bf16.mxu0 %vm1421_vm0, %v1419_v6  ;;  %1370 = vmatprep.mubr.msk.bf16.mxu1 %vm1421_vm0, %v1419_v6 }
  0x72   : > { %v242_v8 = vpop.trf.xlu1  ;;  %v210_v9 = vpop.trf.xlu0 }
  0x73   : > { %v334_v27 = vshrl.u32 %v210_v9, 16  ;;  %v342_v37 = vshrl.u32 %v242_v8, 16 }
  0x76   : > { %v258_v10 = vpop.trf.xlu1  ;;  %v226_v11 = vpop.trf.xlu0 }
  0x77   : > { %v335_v24 = vshrl.u32 %v226_v11, 16  ;;  %v332_v25 = vpack.i.b16 %v226_v11, %v210_v9  ;;  %v343_v28 = vshrl.u32 %v258_v10, 16  ;;  %v340_v33 = vpack.i.b16 %v258_v10, %v242_v8 }
  0x78   : > { %v1420_v11 = vmov 0  }
  0x79   : > { %v336_v38 = vpack.i.b16 %v335_v24, %v334_v27  ;;  %v344_v41 = vpack.i.b16 %v343_v28, %v342_v37  ;;  %v166_v37 = vld [vmem:[%s1452_s14 + $0xc] sm:$0x1] }
  0x7a   : > { %v290_v17 = vpop.trf.xlu1  ;;  %v274_v18 = vpop.trf.xlu0 }
  0x7b   : > { %v351_v21 = vshrl.u32 %v290_v17, 16  ;;  %v348_v22 = vpack.i.b16 %v290_v17, %v274_v18  ;;  %v350_v23 = vshrl.u32 %v274_v18, 16 }
  0x7d   : > { %v352_v29 = vpack.i.b16 %v351_v21, %v350_v23  ;;  %v362_v34 = vcombine.low %v332_v25, %v348_v22  ;;  %v363_v49 = vcombine.high %v332_v25, %v348_v22 }
  0x7e   : > { %v322_v30 = vpop.trf.xlu1  ;;  %v306_v31 = vpop.trf.xlu0 }
  0x7f   : > { %v359_v35 = vshrl.u32 %v322_v30, 16  ;;  %v356_v36 = vpack.i.b16 %v322_v30, %v306_v31  ;;  %v358_v39 = vshrl.u32 %v306_v31, 16  ;;  %v430_v42 = vcombine.low %v336_v38, %v352_v29 }
  0x80   : > { %v370_v45 = vrot.slane %v362_v34, %v1465_v32  ;;  %v431_v57 = vcombine.high %v336_v38, %v352_v29  ;;  %v377_v59 = vrot.slane %v363_v49, %v1465_v32  ;;  %v157_v34 = vld [vmem:[%s1452_s14 + $0x3] sm:$0x1]  ;;  %v169_v38 = vld [vmem:[%s1452_s14 + $0xf] sm:$0x1] }
  0x81   : > { %v378_v40 = vcombine.low %v340_v33, %v356_v36  ;;  %v360_v43 = vpack.i.b16 %v359_v35, %v358_v39  ;;  %v379_v44 = vcombine.high %v340_v33, %v356_v36  ;;  %v438_v52 = vrot.slane %v430_v42, %v1465_v32  ;;  %v154_v33 = vld [vmem:[%s1452_s14] sm:$0x1]  ;;  %v160_v35 = vld [vmem:[%s1452_s14 + $0x6] sm:$0x1]  ;;  %v163_v36 = vld [vmem:[%s1452_s14 + $0x9] sm:$0x1] }
  0x82   : > { %v445_v1 = vrot.slane %v431_v57, %v1465_v32  ;;  %v172_v39 = vld [vmem:[%s1452_s14 + $0x12] sm:$0x1]  ;;  %v187_v49 = vshrl.u32 %v160_v35, 16  ;;  %v180_v57 = vpack.i.b16 %v157_v34, %v154_v33 }
  0x83   : > { %v386_v46 = vrot.slane %v378_v40, %v1465_v32  ;;  %v446_v48 = vcombine.low %v344_v41, %v360_v43  ;;  %v447_v51 = vcombine.high %v344_v41, %v360_v43  ;;  %v393_v56 = vrot.slane %v379_v44, %v1465_v32  ;;  %v175_v40 = vld [vmem:[%s1452_s14 + $0x15] sm:$0x1] }
  0x84   : > { %v1422_v41 = vmov 1966171168   ;;  %v181_v44 = vshrl.u32 %v154_v33, 16 }
  0x85   : > { %v394_v50 = vcombine.low %v370_v45, %v386_v46  ;;  %v454_v53 = vrot.slane %v446_v48, %v1465_v32  ;;  %v395_v55 = vcombine.high %v370_v45, %v386_v46  ;;  %v461_v62 = vrot.slane %v447_v51, %v1465_v32 }
  0x86   : > { %v410_v0 = vcombine.low %v377_v59, %v393_v56  ;;  %v411_v5 = vcombine.high %v377_v59, %v393_v56  ;;  %v863_v42 = vunpack.c.l.s4 %v1422_v41  ;;  %v182_v48 = vshrl.u32 %v157_v34, 16 }
  0x87   : > { %v402_v54 = vrot.slane %v394_v50, %v1470_v47  ;;  %v462_v58 = vcombine.low %v438_v52, %v454_v53  ;;  %v463_v61 = vcombine.high %v438_v52, %v454_v53  ;;  %v409_v63 = vrot.slane %v395_v55, %v1470_v47 }
  0x88   : > { %v478_v3 = vcombine.low %v445_v1, %v461_v62  ;;  %v418_v4 = vrot.slane %v410_v0, %v1470_v47  ;;  %v479_v8 = vcombine.high %v445_v1, %v461_v62  ;;  %v425_v9 = vrot.slane %v411_v5, %v1470_v47 }
  0x89   : > { %498 = vxpose.xlu0.c.b16.start.end [1/1] (short) (narrow) %v402_v54, 16  ;;  %v470_v60 = vrot.slane %v462_v58, %v1470_v47  ;;  %v477_v2 = vrot.slane %v463_v61, %v1470_v47  ;;  %v426_v12 = vcombine.high %v402_v54, %v1420_v11  ;;  %v427_v14 = vcombine.high %v409_v63, %v1420_v11 }
  0x8a   : > { %v486_v7 = vrot.slane %v478_v3, %v1470_v47  ;;  %v493_v10 = vrot.slane %v479_v8, %v1470_v47  ;;  %v428_v16 = vcombine.high %v418_v4, %v1420_v11  ;;  %v429_v18 = vcombine.high %v425_v9, %v1420_v11 }
  0x8b   : > { %514 = vxpose.xlu1.c.b16.start.end [1/1] (short) (narrow) %v470_v60, 16  ;;  %v494_v13 = vcombine.high %v470_v60, %v1420_v11  ;;  %v495_v15 = vcombine.high %v477_v2, %v1420_v11  ;;  %v188_v50 = vshrl.u32 %v163_v36, 16  ;;  %v193_v51 = vshrl.u32 %v166_v37, 16 }
  0x8c   : > { %v496_v17 = vcombine.high %v486_v7, %v1420_v11  ;;  %v497_v19 = vcombine.high %v493_v10, %v1420_v11  ;;  %v194_v52 = vshrl.u32 %v169_v38, 16  ;;  %v199_v53 = vshrl.u32 %v172_v39, 16 }
  0x8d   : > { %562 = vxpose.xlu0.c.b16.start.end [1/1] (short) (narrow) %v409_v63, 16  ;;  %v200_v54 = vshrl.u32 %v175_v40, 16  ;;  %v864_v58 = vunpack.c.0.s8 %v863_v42  ;;  %v186_v61 = vpack.i.b16 %v163_v36, %v160_v35  ;;  %v192_v62 = vpack.i.b16 %v169_v38, %v166_v37 }
  0x8e   : > { %v198_v63 = vpack.i.b16 %v175_v40, %v172_v39  ;;  %v183_v3 = vpack.i.b16 %v182_v48, %v181_v44  ;;  %v189_v5 = vpack.i.b16 %v188_v50, %v187_v49  ;;  %v1349_v49 = vld [vmem:[%s148_s17] ss:$0 sm:$0xff] }
  0x8f   : > { %578 = vxpose.xlu1.c.b16.start.end [1/1] (short) (narrow) %v477_v2, 16  ;;  %v201_v8 = vpack.i.b16 %v200_v54, %v199_v53 }
  0x91   : > { %626 = vxpose.xlu0.c.b16.start.end [1/1] (short) (narrow) %v418_v4, 16 }
  0x93   : > { %642 = vxpose.xlu1.c.b16.start.end [1/1] (short) (narrow) %v486_v7, 16  ;;  %v195_v7 = vpack.i.b16 %v194_v52, %v193_v51 }
  0x95   : > { %690 = vxpose.xlu0.c.b16.start.end [1/1] (short) (narrow) %v425_v9, 16 }
  0x97   : > { %706 = vxpose.xlu1.c.b16.start.end [1/1] (short) (narrow) %v493_v10, 16 }
  0x99   : > { %530 = vxpose.xlu0.c.b16.start.end [1/1] (short) (narrow) %v426_v12, 16  ;;  %v1504_v12 = vsub.s32 %v864_v58, %v1462_v20 }
  0x9b   : > { %546 = vxpose.xlu1.c.b16.start.end [1/1] (short) (narrow) %v494_v13, 16 }
  0x9d   : > { %594 = vxpose.xlu0.c.b16.start.end [1/1] (short) (narrow) %v427_v14, 16 }
  0x9f   : > { %610 = vxpose.xlu1.c.b16.start.end [1/1] (short) (narrow) %v495_v15, 16 }
  0xa1   : > { %658 = vxpose.xlu0.c.b16.start.end [1/1] (short) (narrow) %v428_v16, 16  ;;  %v860_v16 = vcombine.low %v180_v57, %v186_v61 }
  0xa3   : > { %674 = vxpose.xlu1.c.b16.start.end [1/1] (short) (narrow) %v496_v17, 16  ;;  %v861_v17 = vcombine.low %v192_v62, %v198_v63  ;;  %v156_v63 = vld [vmem:[%s1452_s14 + $0x2] sm:$0x1] }
  0xa5   : > { %722 = vxpose.xlu0.c.b16.start.end [1/1] (short) (narrow) %v429_v18, 16 }
  0xa7   : > { %738 = vxpose.xlu1.c.b16.start.end [1/1] (short) (narrow) %v497_v19, 16 }
  0xeb   : > { %v506_v21 = vpop.trf.xlu0 }
  0xed   : > { %v522_v22 = vpop.trf.xlu1 }
  0xef   : > { %v570_v23 = vpop.trf.xlu0 }
  0xf0   : > { %v754_v55 = vcombine.low %v506_v21, %v570_v23  ;;  %v928_v23 = vcombine.low %v183_v3, %v189_v5  ;;  %v168_v3 = vld [vmem:[%s1452_s14 + $0xe] sm:$0x1] }
  0xf1   : > { %v586_v24 = vpop.trf.xlu1 }
  0xf2   : > { %v803_v0 = vcombine.low %v522_v22, %v586_v24  ;;  %v761_v9 = vrot.slane %v754_v55, %v1465_v32  ;;  %v929_v24 = vcombine.low %v195_v7, %v201_v8  ;;  %v936_v33 = vrot.slane %v928_v23, %v1504_v12  ;;  %v174_v7 = vld [vmem:[%s1452_s14 + $0x14] sm:$0x1]  ;;  %v177_v8 = vld [vmem:[%s1452_s14 + $0x17] sm:$0x1] }
  0xf3   : > { %v634_v25 = vpop.trf.xlu0 }
  0xf4   : > { %v810_v18 = vrot.slane %v803_v0, %v1465_v32  ;;  %v943_v34 = vrot.slane %v929_v24, %v1504_v12  ;;  %v159_v0 = vld [vmem:[%s1452_s14 + $0x5] sm:$0x1] }
  0xf5   : > { %v650_v26 = vpop.trf.xlu1  ;;  %v1029_v5 = vpack.i.b16 %v159_v0, %v156_v63 }
  0xf6   : > { %v944_v40 = vcombine.low %v936_v33, %v943_v34 }
  0xf7   : > { %v698_v27 = vpop.trf.xlu0 }
  0xf8   : > { %v770_v59 = vcombine.low %v634_v25, %v698_v27 }
  0xf9   : > { %v714_v28 = vpop.trf.xlu1 }
  0xfa   : > { %v819_v10 = vcombine.low %v650_v26, %v714_v28  ;;  %v777_v13 = vrot.slane %v770_v59, %v1465_v32  ;;  %v868_v28 = vrot.slane %v860_v16, %v1504_v12 }
  0xfb   : > { %v538_v29 = vpop.trf.xlu0 }
  0xfc   : > { %v826_v25 = vrot.slane %v819_v10, %v1465_v32 }
  0xfd   : > { %v554_v30 = vpop.trf.xlu1 }
  0xff   : > { %v602_v31 = vpop.trf.xlu0 }
 0x100   : > { %v762_v45 = vcombine.low %v538_v29, %v602_v31  ;;  %v875_v29 = vrot.slane %v861_v17, %v1504_v12 }
 0x101   : > { %v618_v43 = vpop.trf.xlu1 }
 0x102   : > { %v811_v56 = vcombine.low %v554_v30, %v618_v43  ;;  %v769_v1 = vrot.slane %v762_v45, %v1465_v32  ;;  %v876_v38 = vcombine.low %v868_v28, %v875_v29 }
 0x103   : > { %v666_v46 = vpop.trf.xlu0 }
 0x104   : > { %v818_v11 = vrot.slane %v811_v56, %v1465_v32  ;;  %v786_v19 = vcombine.low %v761_v9, %v769_v1  ;;  %v883_v44 = vrot.slane %v876_v38, %v1504_v12  ;;  %v162_v1 = vld [vmem:[%s1452_s14 + $0x8] sm:$0x1] }
 0x105   : > { %v682_v60 = vpop.trf.xlu1 }
 0x106   : > { %v835_v26 = vcombine.low %v810_v18, %v818_v11  ;;  %v793_v31 = vrot.slane %v786_v19, %v1470_v47  ;;  %v1030_v11 = vshrl.u32 %v156_v63, 16  ;;  %v1042_v18 = vshrl.u32 %v168_v3, 16 }
 0x107   : > { %v730_v2 = vpop.trf.xlu0 }
 0x108   : > { %v778_v4 = vcombine.low %v666_v46, %v730_v2  ;;  %v842_v36 = vrot.slane %v835_v26, %v1470_v47  ;;  %v951_v46 = vrot.slane %v944_v40, %v1504_v12  ;;  %v165_v2 = vld [vmem:[%s1452_s14 + $0xb] sm:$0x1] }
 0x109   : > { %v746_v15 = vpop.trf.xlu1  ;;  %v1035_v9 = vpack.i.b16 %v165_v2, %v162_v1  ;;  %v1037_v16 = vshrl.u32 %v165_v2, 16 }
 0x10a   : > { %v785_v14 = vrot.slane %v778_v4, %v1465_v32  ;;  %v827_v21 = vcombine.low %v682_v60, %v746_v15  ;;  %v171_v4 = vld [vmem:[%s1452_s14 + $0x11] sm:$0x1]  ;;  %v1036_v15 = vshrl.u32 %v162_v1, 16 }
 0x10b   : > { %v1041_v10 = vpack.i.b16 %v171_v4, %v168_v3  ;;  %v1051_v17 = vcombine.low %v1029_v5, %v1035_v9  ;;  %v1043_v19 = vshrl.u32 %v171_v4, 16 }
 0x10c   : > { %v794_v22 = vcombine.low %v777_v13, %v785_v14  ;;  %v834_v20 = vrot.slane %v827_v21, %v1465_v32  ;;  %v1047_v13 = vpack.i.b16 %v177_v8, %v174_v7  ;;  %v1031_v14 = vshrl.u32 %v159_v0, 16 }
 0x10d   : > { %v1048_v21 = vshrl.u32 %v174_v7, 16  ;;  %v1038_v24 = vpack.i.b16 %v1037_v16, %v1036_v15  ;;  %v1059_v26 = vrot.slane %v1051_v17, %v1504_v12 }
 0x10e   : > { %v801_v27 = vrot.slane %v794_v22, %v1470_v47  ;;  %v843_v30 = vcombine.low %v826_v25, %v834_v20  ;;  %v1052_v22 = vcombine.low %v1041_v10, %v1047_v13  ;;  %v1032_v23 = vpack.i.b16 %v1031_v14, %v1030_v11 }
 0x10f   : > { %v1049_v25 = vshrl.u32 %v177_v8, 16  ;;  %v1044_v20 = vpack.i.b16 %v1043_v19, %v1042_v18 }
 0x110   : > { %v802_v35 = vcombine.low %v793_v31, %v801_v27  ;;  %v850_v37 = vrot.slane %v843_v30, %v1470_v47  ;;  %v1066_v27 = vrot.slane %v1052_v22, %v1504_v12  ;;  %v1122_v29 = vcombine.low %v1032_v23, %v1038_v24 }
 0x111   : > { %v1050_v28 = vpack.i.b16 %v1049_v25, %v1048_v21 }
 0x112   : > { %v851_v39 = vcombine.low %v842_v36, %v850_v37  ;;  %v856_v42 = vshrl.u32 %v802_v35, 16  ;;  %v1067_v30 = vcombine.low %v1059_v26, %v1066_v27  ;;  %v1130_v33 = vrot.slane %v1122_v29, %v1504_v12 }
 0x113   : > { %v1123_v31 = vcombine.low %v1044_v20, %v1050_v28 }
 0x114   : > { %v854_v41 = vpack.i.b16 %v851_v39, %v802_v35  ;;  %v857_v43 = vshrl.u32 %v851_v39, 16  ;;  %v1074_v34 = vrot.slane %v1067_v30, %v1504_v12 }
 0x115   : > { %v1137_v35 = vrot.slane %v1123_v31, %v1504_v12 }
 0x116   : > { %1363 = vmatpush3.bf16.msra.mxu0 %v854_v41  ;;  %v858_v45 = vpack.i.b16 %v857_v43, %v856_v42  ;;  %v1080_v36 = vsel %vm1078_vm3, %v1074_v34, 0 }
 0x117   : > { %1374 = vmatprep.subr.bf16.mxu0 %v1419_v6  ;;  %v1138_v37 = vcombine.low %v1130_v33, %v1137_v35 }
 0x118   : > { %1369 = vmatpush3.bf16.msra.mxu1 %v858_v45 }
 0x119   : > { %1365 = vmatmul.mubr.msk.bf16.vlgmr.msra.gmra.mxu0 %vm884_vm1, %v883_v44  ;;  %1380 = vmatprep.subr.bf16.mxu1 %v1419_v6  ;;  %v1145_v38 = vrot.slane %v1138_v37, %v1504_v12 }
 0x11a   : > { %1376 = vmatprep.mubr.msk.bf16.mxu0 %vm1421_vm0, %v1419_v6  ;;  %1375 = vmatpush3.bf16.msra.mxu0 %v1080_v36 }
 0x11b   : > { %1371 = vmatmul.mubr.msk.bf16.vlgmr.msra.gmra.mxu1 %vm884_vm1, %v951_v46  ;;  %v1150_v39 = vsel %vm1078_vm3, %v1145_v38, 0 }
 0x11c   : > { %1382 = vmatprep.mubr.msk.bf16.mxu1 %vm1421_vm0, %v1419_v6  ;;  %1381 = vmatpush3.bf16.msra.mxu1 %v1150_v39 }
 0x1d9   : > { %v922_v48 = vpop.f32.mrf.mxu0 }
 0x1da   : > { %v995_v50 = vmul.f32 0.25, %v922_v48 }
 0x1db   : > { %v1366_v51 = vpop.f32.mrf.mxu0  ;;  %v989_v52 = vpop.f32.mrf.mxu1 }
 0x1dc   : > { %v996_v53 = vmul.f32 0.25, %v989_v52  ;;  %v1004_v54 = vadd.f32 %v1349_v49, %v995_v50 }
 0x1dd   : > { %v925_v55 = vpop.f32.mrf.mxu0  ;;  %v1372_v56 = vpop.f32.mrf.mxu1 }
 0x1de   : > { %v1007_v57 = vsel %vm1006_vm2, %v1004_v54, -inf  ;;  %v1005_v58 = vadd.f32 %v1349_v49, %v996_v53 }
 0x1df   : > { %v992_v59 = vpop.f32.mrf.mxu1  ;;  %1008 = vmax.xlane.f32.xlu0 %v1007_v57  ;;  %v1367_v60 = vpop.f32.mrf.mxu0 }
 0x1e0   : > { %v1010_v61 = vsel %vm1006_vm2, %v1005_v58, -inf }
 0x1e1   : > { %1011 = vmax.xlane.f32.xlu1 %v1010_v61  ;;  %v1373_v62 = vpop.f32.mrf.mxu1 }
 0x268   : > { %v1009_v40 = vpop.xlane.xlu0 %1008 }
 0x269   : > { %v1013_v41 = vsub.f32 %v1004_v54, %v1009_v40 }
 0x26a   : > { %v1012_v42 = vpop.xlane.xlu1 %1011 }
 0x26b   : > { %v1015_v43 = vmul.f32 1.442695, %v1013_v41  ;;  %v1014_v44 = vsub.f32 %v1005_v58, %v1012_v42 }
 0x26d   : > { %1401 = vpow2.f32 %v1015_v43  ;;  %v1017_v45 = vmul.f32 1.442695, %v1014_v44 }
 0x26f   : > { %1403 = vpow2.f32 %v1017_v45 }
 0x27a   : > { %v1402_v46 = vpop.eup %1401 }
 0x27b   : > { %v1019_v48 = vsel %vm1006_vm2, %v1402_v46, 0.0  ;;  %v1025_v49 = vpack.c.bf16 %v1402_v46, %v1402_v46 }
 0x27c   : > { %v1404_v50 = vpop.eup %1403  ;;  %1020 = vadd.xlane.f32.xlu0 %v1019_v48 }
 0x27d   : > { %1377 = vmatmul.mubr.msk.bf16.vlgmr.msra.gmra.mxu0 %vm1006_vm2, %v1025_v49  ;;  %v1022_v12 = vsel %vm1006_vm2, %v1404_v50, 0.0  ;;  %v1026_v51 = vpack.c.bf16 %v1404_v50, %v1404_v50 }
 0x27e   : > { %1023 = vadd.xlane.f32.xlu1 %v1022_v12 }
 0x27f   : > { %1383 = vmatmul.mubr.msk.bf16.vlgmr.msra.gmra.mxu1 %vm1006_vm2, %v1026_v51 }
 0x305   : > { %v1021_v52 = vpop.xlane.xlu0 %1020 }
 0x306   : > { %1405 = vrcp.f32 %v1021_v52 }
 0x307   : > { %v1024_v53 = vpop.xlane.xlu1 %1023 }
 0x308   : > { %1407 = vrcp.f32 %v1024_v53 }
 0x313   : > { %v1406_v54 = vpop.eup %1405 }
 0x315   : > { %v1408_v57 = vpop.eup %1407 }
 0x33d   : > { %v1116_v55 = vpop.f32.mrf.mxu0 }
 0x33e   : > { %v1194_v56 = vmul.f32 %v1406_v54, %v1116_v55 }
 0x33f   : > { %v1378_v58 = vpop.f32.mrf.mxu0  ;;  %v1186_v59 = vpop.f32.mrf.mxu1 }
 0x340   : > { %v1196_v60 = vcombine.high %v1194_v56, %v1419_v6  ;;  %v1195_v61 = vmul.f32 %v1408_v57, %v1186_v59  ;;  %v1203_v0 = vrot.slane %v1194_v56, %v1465_v32 }
 0x341   : > { %v1119_v62 = vpop.f32.mrf.mxu0  ;;  %v1384_v63 = vpop.f32.mrf.mxu1 }
 0x342   : > { %v1211_v1 = vcombine.high %v1195_v61, %v1419_v6  ;;  %v1218_v2 = vrot.slane %v1195_v61, %v1465_v32  ;;  %v1210_v5 = vrot.slane %v1196_v60, %v1465_v32 }
 0x343   : > { %v1379_v3 = vpop.f32.mrf.mxu0  ;;  %v1189_v4 = vpop.f32.mrf.mxu1 }
 0x344   : > { %v1225_v7 = vrot.slane %v1211_v1, %v1465_v32  ;;  %v1226_v8 = vcombine.low %v1203_v0, %v1218_v2  ;;  %v1227_v9 = vcombine.high %v1203_v0, %v1218_v2 }
 0x345   : > { %v1385_v10 = vpop.f32.mrf.mxu1 }
 0x346   : > { %v1234_v11 = vrot.slane %v1226_v8, %v1470_v47  ;;  %v1241_v13 = vrot.slane %v1227_v9, %v1470_v47  ;;  %v1242_v14 = vcombine.low %v1210_v5, %v1225_v7  ;;  %v1243_v15 = vcombine.high %v1210_v5, %v1225_v7 }
 0x348   : > { %v1250_v16 = vrot.slane %v1242_v14, %v1470_v47  ;;  %v1257_v17 = vrot.slane %v1243_v15, %v1470_v47  ;;  %v1258_v32 = vcombine.high %v1234_v11, %v1419_v6  ;;  %v1259_v18 = vcombine.high %v1241_v13, %v1419_v6 }
 0x349   : > { %v1262_v19 = vpack.c.bf16 %v1234_v11, %v1234_v11  ;;  %v1264_v21 = vpack.c.bf16 %v1241_v13, %v1241_v13 }
 0x34a   : > { %v1260_v22 = vcombine.high %v1250_v16, %v1419_v6  ;;  %v1261_v23 = vcombine.high %v1257_v17, %v1419_v6  ;;  %v1263_v24 = vpack.c.bf16 %v1258_v32, %v1258_v32  ;;  %v1265_v25 = vpack.c.bf16 %v1259_v18, %v1259_v18 }
 0x34b   : > { %v1266_v26 = vpack.c.bf16 %v1250_v16, %v1250_v16  ;;  %v1268_v20 = vpack.c.bf16 %v1257_v17, %v1257_v17  ;;  %1271 = vst.msk [vmem:[%s152_s21] sm:$0x1] %vm1270_vm4, %v1262_v19  ;;  %1273 = vst.msk [vmem:[%s152_s21 + $0x2] sm:$0x1] %vm1270_vm4, %v1264_v21 }
 0x34c   : > { %v1267_v27 = vpack.c.bf16 %v1260_v22, %v1260_v22  ;;  %v1269_v47 = vpack.c.bf16 %v1261_v23, %v1261_v23  ;;  %1272 = vst.msk [vmem:[%s152_s21 + $0x1] sm:$0x1] %vm1270_vm4, %v1263_v24  ;;  %1274 = vst.msk [vmem:[%s152_s21 + $0x3] sm:$0x1] %vm1270_vm4, %v1265_v25 }
 0x34d   : > { %1275 = vst.msk [vmem:[%s152_s21 + $0x4] sm:$0x1] %vm1270_vm4, %v1266_v26  ;;  %1277 = vst.msk [vmem:[%s152_s21 + $0x6] sm:$0x1] %vm1270_vm4, %v1268_v20 }
 0x34e   : > { %1276 = vst.msk [vmem:[%s152_s21 + $0x5] sm:$0x1] %vm1270_vm4, %v1267_v27  ;;  %1278 = vst.msk [vmem:[%s152_s21 + $0x7] sm:$0x1] %vm1270_vm4, %v1269_v47 }
 0x34f PF: > { %s12_s9 = sadd.s32 1, %s1415_s9  }
 0x350   : > { %p9_p4 = scmp.ge.s32.totalorder %s12_s9, 4  }
 0x352   :  { %11 = sbr.rel (!%p9_p4) target bundleno = 1 (0x1), region = 61 }

// kernel: bert_classifier_forward.16
= control target key start
LH: loop header
LB: loop body
LE: loop exit
PB: predicated region body
PF: predicated region fallthrough
CT: control target
= control target key end

     0   :  { %v152_v0 = vmov 0.0   ;;  %vm153_vm0 = vmmov 0   ;;  %vm45_vm1 = vcmask 261120   ;;  %vm116_vm2 = vcmask 519168   ;;  %s192_s1 = inlined_call_operand.vmem [shape: bf16[32,64], index: 1, kind: input, shape index: {}]   ;;  %s193_s0 = inlined_call_operand.vmem [shape: bf16[16,32], index: 0, kind: input, shape index: {}]   ;;  %s194_s2 = inlined_call_operand.vmem [shape: f32[1,64], index: 2, kind: input, shape index: {}]   ;;  %s195_s3 = inlined_call_operand.vmem [shape: bf16[16,64], index: 3, kind: output, shape index: {}]  }
   0x1   :  { %135 = vmatprep.subr.bf16.mxu0 %v152_v0  ;;  %v145_v1 = vld [vmem:[%s192_s1 + $0x8] sm:$0xff]   ;;  %139 = vmatprep.mubr.msk.bf16.mxu0 %vm153_vm0, %v152_v0  ;;  %v146_v2 = vld [vmem:[%s192_s1] sm:$0xff]  }
   0x2   :  { %136 = vmatpush3.bf16.msra.mxu0 %v145_v1  ;;  %v147_v3 = vld [vmem:[%s193_s0] sm:$0xff]  }
   0x3   :  { %137 = vmatprep.subr.bf16.mxu0 %v152_v0  ;;  %v123_v4 = vld [vmem:[%s194_s2] ss:$0 sm:$0xff] }
   0x6   :  { %138 = vmatpush3.bf16.msra.mxu0 %v146_v2 }
   0x9   :  { %140 = vmatmul.mubr.msk.bf16.vlgmr.msra.gmra.mxu0 %vm45_vm1, %v147_v3 }
  0xc9   :  { %v83_v5 = vpop.f32.mrf.mxu0 }
  0xca   :  { %v84_v6 = vadd.f32 %v123_v4, %v83_v5 }
  0xcb   :  { %v141_v7 = vpop.f32.mrf.mxu0 }
  0xcc   :  { %v92_v8 = vmul.f32 0.044715, %v84_v6  ;;  %v90_v22 = vmul.f32 0.5, %v84_v6 }
  0xcd   :  { %v86_v9 = vpop.f32.mrf.mxu0 }
  0xce   :  { %v94_v10 = vmul.f32 %v92_v8, %v84_v6  ;;  %v87_v11 = vadd.f32 %v123_v4, %v86_v9 }
  0xcf   :  { %v142_v12 = vpop.f32.mrf.mxu0 }
  0xd0   :  { %v96_v13 = vmul.f32 %v94_v10, %v84_v6  ;;  %v93_v14 = vmul.f32 0.044715, %v87_v11  ;;  %v91_v27 = vmul.f32 0.5, %v87_v11 }
  0xd2   :  { %v98_v15 = vadd.f32 %v96_v13, %v84_v6  ;;  %v95_v16 = vmul.f32 %v93_v14, %v87_v11 }
  0xd4   :  { %v100_v17 = vmul.f32 0.7978846, %v98_v15  ;;  %v97_v18 = vmul.f32 %v95_v16, %v87_v11 }
  0xd6   :  { %148 = vtanh.f32 %v100_v17  ;;  %v99_v19 = vadd.f32 %v97_v18, %v87_v11 }
  0xd8   :  { %v101_v20 = vmul.f32 0.7978846, %v99_v19 }
  0xda   :  { %150 = vtanh.f32 %v101_v20 }
  0xe3   :  { %v149_v21 = vpop.eup %148 }
  0xe4   :  { %v104_v23 = vadd.f32 1.0, %v149_v21 }
  0xe6   :  { %v106_v24 = vmul.f32 %v104_v23, %v90_v22 }
  0xe7   :  { %v151_v25 = vpop.eup %150 }
  0xe8   :  { %v130_v26 = vpack.c.bf16 %v106_v24, %v106_v24  ;;  %v105_v28 = vadd.f32 1.0, %v151_v25 }
  0xea   :  { %117 = vst.msk [vmem:[%s195_s3] sm:$0xf] %vm116_vm2, %v130_v26  ;;  %v107_v29 = vmul.f32 %v105_v28, %v91_v27 }
  0xec   :  { %v131_v30 = vpack.c.bf16 %v107_v29, %v107_v29 }
  0xee   :  { %118 = vst.msk [vmem:[%s195_s3 + $0x4] sm:$0xf] %vm116_vm2, %v131_v30 }

// kernel: bert_classifier_forward.23
= control target key start
LH: loop header
LB: loop body
LE: loop exit
PB: predicated region body
PF: predicated region fallthrough
CT: control target
= control target key end

     0   :  { %v235_v1 = vmov 0.0   ;;  %vm236_vm0 = vmmov 0   ;;  %s294_s0 = inlined_call_operand.vmem [shape: bf16[2,32], index: 0, kind: input, shape index: {}]   ;;  %s295_s1 = inlined_call_operand.vmem [shape: bf16[32,32], index: 1, kind: input, shape index: {}]   ;;  %s296_s2 = inlined_call_operand.vmem [shape: f32[1,32], index: 2, kind: input, shape index: {}]   ;;  %s297_s3 = inlined_call_operand.vmem [shape: bf16[32,2], index: 3, kind: input, shape index: {}]   ;;  %s298_s4 = inlined_call_operand.vmem [shape: f32[1,2], index: 4, kind: input, shape index: {}]   ;;  %s299_s5 = inlined_call_operand.hbm [shape: f32[2,2], index: 5, kind: output, shape index: {}]  }
   0x1   :  { %v207_v0 = vld [vmem:[%s295_s1 + $0x8] sm:$0xff]   ;;  %188 = vmatprep.subr.bf16.mxu0 %v235_v1  ;;  %196 = vmatprep.subr.bf16.mxu1 %v235_v1  ;;  %v208_v2 = vld [vmem:[%s295_s1] sm:$0xff]  }
   0x2   :  { %189 = vmatpush3.bf16.msra.mxu0 %v207_v0  ;;  %192 = vmatprep.mubr.msk.bf16.mxu0 %vm236_vm0, %v235_v1 }
   0x3   :  { %190 = vmatprep.subr.bf16.mxu0 %v235_v1  ;;  %200 = vmatprep.mubr.msk.bf16.mxu1 %vm236_vm0, %v235_v1 }
   0x4   :  { %10 = vsyncpa [#allocation3], 0  ;;  %v22_v3 = vld [vmem:[%s294_s0] sm:$0x1]  ;;  %vm46_vm1 = vcmask 261120   ;;  %v209_v4 = vld [vmem:[%s297_s3 + $0x8] sm:$0xff]  }
   0x5   :  { %197 = vmatpush3.bf16.msra.mxu1 %v209_v4  ;;  %v210_v5 = vld [vmem:[%s297_s3] sm:$0xff]   ;;  %s237_s3 = smov [#allocation2]   ;;  %vm158_vm2 = vcmask 9216  }
   0x6   :  { %191 = vmatpush3.bf16.msra.mxu0 %v208_v2  ;;  %198 = vmatprep.subr.bf16.mxu1 %v235_v1  ;;  %v174_v6 = vld [vmem:[%s296_s2] ss:$0 sm:$0xff]  ;;  %s166_s30 = sshll.u32 %s237_s3, 4  ;;  %s167_s30 = int_to_ptr.vmem [resolvable:$true] %s166_s30 }
   0x7   :  { %v178_v14 = vld [vmem:[%s298_s4] ss:$0 sm:$0xff]  ;;  %s213_s2 = scalar_lea.vmem %s167_s30, 32  ;;  %p218_p1 = scmp.lt.s32.totalorder %s167_s30, %s167_s30 }
   0x8   :  { %p214_p0 = scmp.ne.s32.totalorder %s167_s30, %s213_s2  ;;  %p219_p2 = scmp.lt.s32.totalorder %s213_s2, %s213_s2 }
   0x9   :  { %193 = vmatmul.mubr.msk.bf16.vlgmr.msra.gmra.mxu0 %vm46_vm1, %v22_v3  ;;  %199 = vmatpush3.bf16.msra.mxu1 %v210_v5 }
   0xa   :  { %p220_p3 = por %p219_p2, %p218_p1 }
   0xc   :  { %p221_p4 = pnand %p220_p3, %p214_p0 }
  0xc9   :  { %v84_v7 = vpop.f32.mrf.mxu0 }
  0xca   :  { %v85_v8 = vadd.f32 %v174_v6, %v84_v7 }
  0xcb   :  { %v194_v9 = vpop.f32.mrf.mxu0 }
  0xcc   :  { %211 = vtanh.f32 %v85_v8 }
  0xcd   :  { %v87_v10 = vpop.f32.mrf.mxu0 }
  0xcf   :  { %v195_v11 = vpop.f32.mrf.mxu0 }
  0xd9   :  { %v212_v12 = vpop.eup %211 }
  0xda   :  { %v91_v13 = vpack.c.bf16 %v212_v12, %v212_v12 }
  0xdc   :  { %201 = vmatmul.mubr.msk.bf16.vlgmr.msra.gmra.mxu1 %vm46_vm1, %v91_v13 }
 0x19c   :  { %v152_v15 = vpop.f32.mrf.mxu1 }
 0x19d   :  { %v153_v16 = vadd.f32 %v178_v14, %v152_v15 }
 0x19e   :  { %v202_v17 = vpop.f32.mrf.mxu1 }
 0x19f   :  { %159 = vst.msk [vmem:[#allocation2] sm:$0x3] %vm158_vm2, %v153_v16 }
 0x1a0   :  { %v155_v18 = vpop.f32.mrf.mxu1 }
 0x1a1   :  { %224 = shalt.err (!%p221_p4)
}
 0x1a2   :  { %169 = dma.vmem_to_hbm [thread:$0]  %s167_s30, 32, %s299_s5, [#allocation3]   ;;  %v203_v19 = vpop.f32.mrf.mxu1 }
 0x1a3   :  { %233 = dma.done.wait [#allocation3], 32  }
 0x1a4   :  { %234 = vsyncadd [#allocation3], 4294967264 }
 0x1a5   :  { %173 = vsyncpa [#allocation3], 1 }

// kernel: bert_classifier_forward.17
= control target key start
LH: loop header
LB: loop body
LE: loop exit
PB: predicated region body
PF: predicated region fallthrough
CT: control target
= control target key end

     0   :  { %v227_v0 = vmov 0.0   ;;  %vm228_vm0 = vmmov 0   ;;  %vm70_vm1 = vcmask 523264   ;;  %vm121_vm2 = vcmask 261120   ;;  %s301_s1 = inlined_call_operand.vmem [shape: bf16[64,32], index: 1, kind: input, shape index: {}]   ;;  %s302_s0 = inlined_call_operand.vmem [shape: bf16[16,64], index: 0, kind: input, shape index: {}]   ;;  %s303_s3 = inlined_call_operand.vmem [shape: bf16[16,32], index: 3, kind: input, shape index: {}]   ;;  %s304_s2 = inlined_call_operand.vmem [shape: f32[1,32], index: 2, kind: input, shape index: {}]   ;;  %s305_s4 = inlined_call_operand.vmem [shape: f32[1,32], index: 4, kind: input, shape index: {}]   ;;  %s306_s5 = inlined_call_operand.vmem [shape: f32[1,32], index: 5, kind: input, shape index: {}]   ;;  %s307_s6 = inlined_call_operand.vmem [shape: bf16[16,32], index: 6, kind: output, shape index: {}]  }
   0x1   :  { %204 = vmatprep.subr.bf16.mxu0 %v227_v0  ;;  %v218_v1 = vld [vmem:[%s301_s1 + $0x18] sm:$0xff]   ;;  %212 = vmatprep.mubr.msk.bf16.mxu0 %vm228_vm0, %v227_v0  ;;  %v219_v2 = vld [vmem:[%s301_s1 + $0x10] sm:$0xff]   ;;  %v220_v3 = vld [vmem:[%s301_s1 + $0x8] sm:$0xff]   ;;  %vm175_vm3 = vcmask 257024  }
   0x2   :  { %205 = vmatpush3.bf16.msra.mxu0 %v218_v1  ;;  %v221_v4 = vld [vmem:[%s301_s1] sm:$0xff]  }
   0x3   :  { %206 = vmatprep.subr.bf16.mxu0 %v227_v0  ;;  %v222_v5 = vld [vmem:[%s302_s0] sm:$0xff]  }
   0x4   :  { %v196_v6 = vld [vmem:[%s303_s3] sm:$0xff]  }
   0x5   :  { %v182_v7 = vld [vmem:[%s304_s2] ss:$0 sm:$0xff]  ;;  %v197_v8 = vunpack.c.l.bf16 %v196_v6  ;;  %v198_v13 = vunpack.c.h.bf16 %v196_v6 }
   0x6   :  { %207 = vmatpush3.bf16.msra.mxu0 %v219_v2  ;;  %v189_v37 = vld [vmem:[%s305_s4] ss:$0 sm:$0xff] }
   0x7   :  { %208 = vmatprep.subr.bf16.mxu0 %v227_v0  ;;  %v190_v39 = vld [vmem:[%s306_s5] ss:$0 sm:$0xff] }
   0xa   :  { %209 = vmatpush3.bf16.msra.mxu0 %v220_v3 }
   0xb   :  { %210 = vmatprep.subr.bf16.mxu0 %v227_v0 }
   0xe   :  { %211 = vmatpush3.bf16.msra.mxu0 %v221_v4 }
  0x11   :  { %213 = vmatmul.mubr.msk.bf16.vlgmr.msra.gmra.mxu0 %vm70_vm1, %v222_v5 }
  0xd1   :  { %v108_v9 = vpop.f32.mrf.mxu0 }
  0xd2   :  { %v109_v10 = vadd.f32 %v182_v7, %v108_v9 }
  0xd3   :  { %v214_v11 = vpop.f32.mrf.mxu0 }
  0xd4   :  { %v119_v12 = vadd.f32 %v197_v8, %v109_v10 }
  0xd5   :  { %v111_v14 = vpop.f32.mrf.mxu0 }
  0xd6   :  { %v112_v15 = vadd.f32 %v182_v7, %v111_v14  ;;  %v122_v16 = vsel %vm121_vm2, %v119_v12, 0.0 }
  0xd7   :  { %123 = vadd.xlane.f32.xlu0 %v122_v16  ;;  %v215_v17 = vpop.f32.mrf.mxu0 }
  0xd8   :  { %v120_v18 = vadd.f32 %v198_v13, %v112_v15 }
  0xda   :  { %v125_v19 = vsel %vm121_vm2, %v120_v18, 0.0 }
  0xdb   :  { %126 = vadd.xlane.f32.xlu0 %v125_v19 }
 0x160   :  { %v124_v20 = vpop.xlane.xlu0 %123 }
 0x161   :  { %v129_v21 = vmul.f32 0.03125, %v124_v20 }
 0x163   :  { %v131_v22 = vsub.f32 %v119_v12, %v129_v21 }
 0x164   :  { %v127_v23 = vpop.xlane.xlu0 %126 }
 0x165   :  { %v130_v24 = vmul.f32 0.03125, %v127_v23  ;;  %v133_v25 = vmul.f32 %v131_v22, %v131_v22 }
 0x167   :  { %v132_v26 = vsub.f32 %v120_v18, %v130_v24  ;;  %v135_v27 = vsel %vm121_vm2, %v133_v25, 0.0 }
 0x168   :  { %136 = vadd.xlane.f32.xlu1 %v135_v27 }
 0x169   :  { %v134_v28 = vmul.f32 %v132_v26, %v132_v26 }
 0x16b   :  { %v138_v29 = vsel %vm121_vm2, %v134_v28, 0.0 }
 0x16c   :  { %139 = vadd.xlane.f32.xlu1 %v138_v29 }
 0x1f1   :  { %v137_v30 = vpop.xlane.xlu1 %136 }
 0x1f2   :  { %v141_v31 = vmul.f32 0.03125, %v137_v30 }
 0x1f4   :  { %v143_v32 = vadd.f32 1e-12, %v141_v31 }
 0x1f5   :  { %v140_v33 = vpop.xlane.xlu1 %139 }
 0x1f6   :  { %223 = vrsqrt.f32 %v143_v32  ;;  %v142_v34 = vmul.f32 0.03125, %v140_v33 }
 0x1f8   :  { %v144_v35 = vadd.f32 1e-12, %v142_v34 }
 0x1fa   :  { %225 = vrsqrt.f32 %v144_v35 }
 0x203   :  { %v224_v36 = vpop.eup %223 }
 0x204   :  { %v147_v38 = vmul.f32 %v224_v36, %v131_v22 }
 0x206   :  { %v156_v40 = vmul.f32 %v189_v37, %v147_v38 }
 0x207   :  { %v226_v41 = vpop.eup %225 }
 0x208   :  { %v165_v42 = vadd.f32 %v190_v39, %v156_v40  ;;  %v148_v43 = vmul.f32 %v226_v41, %v132_v26 }
 0x20a   :  { %v193_v44 = vpack.c.bf16 %v165_v42, %v165_v42  ;;  %v157_v45 = vmul.f32 %v189_v37, %v148_v43 }
 0x20c   :  { %176 = vst.msk [vmem:[%s307_s6] sm:$0xf] %vm175_vm3, %v193_v44  ;;  %v166_v46 = vadd.f32 %v190_v39, %v157_v45 }
 0x20e   :  { %v194_v47 = vpack.c.bf16 %v166_v46, %v166_v46 }
 0x210   :  { %177 = vst.msk [vmem:[%s307_s6 + $0x4] sm:$0xf] %vm175_vm3, %v194_v47 }

</bundles_post_ra>
